<compile_context>
chip_gen: v5e
topology: v5e:2x2
jax: 0.10.0
libtpu: 0.0.40
codegen_flags: <defaults>
</compile_context>

<pallas_src>
import functools

import jax
import jax.numpy as jnp
from jax import lax
from jax.experimental import pallas as pl
from jax.experimental.pallas import tpu as pltpu

NUM_HEADS = 4
EPS = 1e-5
NEG_INF = -1e6


def _layer_norm(z, gamma, beta):
    mu = jnp.mean(z, axis=-1, keepdims=True)
    var = jnp.mean((z - mu) ** 2, axis=-1, keepdims=True)
    return (z - mu) * lax.rsqrt(var + EPS) * gamma + beta


def encoder_block_kernel(vl_ref,                      # SMEM, (B,) int32 (scalar prefetch)
                         x_ref,                       # (M, H) f32, M = Bt*S
                         wqkv_ref, bqkv_ref,          # (3*nh, H, dh) bf16, (3*nh, 1, dh) f32
                         wo_ref, bo_ref,              # (nh, dh, H) bf16, (1, H) f32
                         g1_ref, be1_ref,
                         w1_ref, b1_ref, w2_ref, b2_ref,
                         g2_ref, be2_ref,
                         out_ref, *, seq_len, num_heads):
    x = x_ref[...]                                   # (M, H) f32
    M, H = x.shape
    S = seq_len
    Bt = M // S
    nh = num_heads

    xb = x.astype(jnp.bfloat16)                      # single cast, reused by all heads

    # ---- additive key-validity mask, (Bt, 1, S), broadcasts over queries ----
    # valid_len comes from SMEM (scalar prefetch), indexed by this batch block.
    base = pl.program_id(0) * Bt
    iota_s = lax.broadcasted_iota(jnp.int32, (1, 1, S), 2)
    neg_mask = jnp.concatenate(
        [jnp.where(iota_s < vl_ref[base + b], jnp.float32(0.0), jnp.float32(NEG_INF))
         for b in range(Bt)],
        axis=0)                                      # (Bt, 1, S) f32

    bqkv = bqkv_ref[...]                             # (3*nh, 1, dh) f32, loaded once

    # ---- per-head attention; each head's context goes straight through its
    #      Wo slice and is accumulated (no head concat / lane slicing anywhere).
    #      1/sqrt(dh) is already folded into the Q weights/bias.
    # TODO(synk): for long sequences, tile the key axis with online softmax
    # instead of materializing the (Bt, S, S) scores.
    attn_acc = jnp.zeros((M, H), jnp.float32)
    for h in range(nh):                              # static unroll, nh small
        qh = jnp.dot(xb, wqkv_ref[h], preferred_element_type=jnp.float32) + bqkv[h]
        kh = jnp.dot(xb, wqkv_ref[nh + h], preferred_element_type=jnp.float32) + bqkv[nh + h]
        vh = jnp.dot(xb, wqkv_ref[2 * nh + h], preferred_element_type=jnp.float32) + bqkv[2 * nh + h]
        dh = qh.shape[-1]

        q3 = qh.reshape(Bt, S, dh).astype(jnp.bfloat16)   # leading-dim split: cheap
        k3 = kh.reshape(Bt, S, dh).astype(jnp.bfloat16)
        v3 = vh.reshape(Bt, S, dh).astype(jnp.bfloat16)

        scores = jnp.einsum("bqd,bkd->bqk", q3, k3,
                            preferred_element_type=jnp.float32)       # (Bt, S, S)
        scores = scores + neg_mask                                    # broadcast over q
        m = jnp.max(scores, axis=-1, keepdims=True)
        p = jnp.exp(scores - m)
        denom = jnp.sum(p, axis=-1, keepdims=True)
        attn = p * pl.reciprocal(denom, approx=True)                  # EUP slot

        ctx = jnp.einsum("bqk,bkd->bqd", attn.astype(jnp.bfloat16), v3,
                         preferred_element_type=jnp.float32)          # (Bt, S, dh)
        attn_acc = attn_acc + jnp.dot(ctx.reshape(M, dh).astype(jnp.bfloat16),
                                      wo_ref[h],                       # (dh, H) bf16
                                      preferred_element_type=jnp.float32)

    attn_out = attn_acc + bo_ref[...]

    # ---- AddNorm1 (dropout == identity in eval mode) ------------------------
    z1 = _layer_norm(x + attn_out, g1_ref[...], be1_ref[...])

    # ---- position-wise FFN ---------------------------------------------------
    h1 = jnp.dot(z1.astype(jnp.bfloat16), w1_ref[...],
                 preferred_element_type=jnp.float32) + b1_ref[...]
    h1 = jnp.maximum(h1, 0.0)
    y2 = jnp.dot(h1.astype(jnp.bfloat16), w2_ref[...],
                 preferred_element_type=jnp.float32) + b2_ref[...]

    # ---- AddNorm2 ------------------------------------------------------------
    out_ref[...] = _layer_norm(z1 + y2, g2_ref[...], be2_ref[...])


def _default_batch_block(batch, seq_len):
    """v7x has 2 TensorCores per chip: give the 'parallel' batch-block axis 2
    steps there.  v5e/v6e keep one step (avoids per-step grid overhead)."""
    try:
        kind = jax.devices()[0].device_kind.lower()
    except Exception:
        kind = ""
    two_tensorcores = "7" in kind
    if two_tensorcores and batch % 2 == 0 and ((batch // 2) * seq_len) % 8 == 0:
        return batch // 2
    return batch


def encoder_block(x, valid_len, params, *, batch_block=None):
    B, S, H = x.shape
    F = params["w1"].shape[1]
    nh = NUM_HEADS
    assert H % nh == 0
    dh = H // nh

    if batch_block is None:
        batch_block = _default_batch_block(B, S)
    assert B % batch_block == 0
    Bt = batch_block
    nb = B // Bt
    M = Bt * S
    assert nb == 1 or M % 8 == 0, "batch_block*seq_len must be a multiple of 8"

    # Flat (B*S, H) row layout: the kernel sees one (M, H) slab per grid step
    # and every matmul gets M = Bt*S rows (batch folded into the MXU M dim).
    x2d = x.reshape(B * S, H)
    vl = valid_len.reshape(B).astype(jnp.int32)

    # ---- host-side weight prep ----------------------------------------------
    scale = 1.0 / float(dh) ** 0.5
    wq = params["wq"] * scale            # fold softmax scale into Q projection
    bq = params["bq"] * scale

    def per_head_w(w):                   # (H, H) -> (nh, H, dh), head-leading
        return w.reshape(H, nh, dh).transpose(1, 0, 2)

    def per_head_b(b):                   # (1, H) -> (nh, 1, dh)
        return b.reshape(nh, 1, dh)

    wqkv = jnp.concatenate([per_head_w(wq), per_head_w(params["wk"]),
                            per_head_w(params["wv"])], axis=0).astype(jnp.bfloat16)
    bqkv = jnp.concatenate([per_head_b(bq), per_head_b(params["bk"]),
                            per_head_b(params["bv"])], axis=0)          # f32
    wo = params["wo"].reshape(nh, dh, H).astype(jnp.bfloat16)           # head-leading
    w1 = params["w1"].astype(jnp.bfloat16)
    w2 = params["w2"].astype(jnp.bfloat16)

    # Grid-invariant operands: full blocks, constant index maps (fetched once
    # per grid; tiny here, so default double-buffering is harmless).
    def const2(shape):
        return pl.BlockSpec(shape, lambda b, vl_s: (0, 0))

    def const3(shape):
        return pl.BlockSpec(shape, lambda b, vl_s: (0, 0, 0))

    in_specs = [
        pl.BlockSpec((M, H), lambda b, vl_s: (b, 0)),   # x rows of this batch block
        const3((3 * nh, H, dh)),                        # Wqkv (per-head, bf16)
        const3((3 * nh, 1, dh)),                        # bqkv
        const3((nh, dh, H)),                            # Wo (per-head, bf16)
        const2((1, H)),                                 # bo
        const2((1, H)), const2((1, H)),                 # gamma1, beta1
        const2((H, F)), const2((1, F)),                 # W1, b1
        const2((F, H)), const2((1, H)),                 # W2, b2
        const2((1, H)), const2((1, H)),                 # gamma2, beta2
    ]
    out_specs = pl.BlockSpec((M, H), lambda b, vl_s: (b, 0))

    grid_spec = pltpu.PrefetchScalarGridSpec(
        num_scalar_prefetch=1,           # valid_len -> SMEM, visible to index maps
        grid=(nb,),
        in_specs=in_specs,
        out_specs=out_specs,
    )

    kernel = functools.partial(encoder_block_kernel, seq_len=S, num_heads=nh)

    out2d = pl.pallas_call(
        kernel,
        out_shape=jax.ShapeDtypeStruct((B * S, H), jnp.float32),
        grid_spec=grid_spec,
        compiler_params=pltpu.CompilerParams(
            dimension_semantics=("parallel",),          # batch blocks are independent
        ),
    )(
        vl, x2d,
        wqkv, bqkv,
        wo, params["bo"],
        params["g1"], params["be1"],
        w1, params["b1"], w2, params["b2"],
        params["g2"], params["be2"],
    )
    return out2d.reshape(B, S, H)


def encoder_block_ref(x, valid_len, params, matmul_dtype=jnp.float32):
    """Plain-JAX reference.  matmul_dtype=jnp.float32 reproduces the original
    module exactly; matmul_dtype=jnp.bfloat16 mirrors the kernel's precision
    choices (bf16 MXU operands, f32 accumulation) for a tight comparison."""
    B, S, H = x.shape
    dh = H // NUM_HEADS
    md = matmul_dtype

    def mm(a, b):
        return jnp.dot(a.astype(md), b.astype(md),
                       preferred_element_type=jnp.float32)

    q = mm(x, params["wq"]) + params["bq"]
    k = mm(x, params["wk"]) + params["bk"]
    v = mm(x, params["wv"]) + params["bv"]

    def split(t):  # (B,S,H) -> (B,nh,S,dh)
        return t.reshape(B, S, NUM_HEADS, dh).transpose(0, 2, 1, 3)

    qh, kh, vh = split(q), split(k), split(v)
    scores = jnp.einsum("bhqd,bhkd->bhqk", qh.astype(md), kh.astype(md),
                        preferred_element_type=jnp.float32) / jnp.sqrt(jnp.float32(dh))
    col = lax.broadcasted_iota(jnp.int32, (B, 1, 1, S), 3)
    mask = col < valid_len[:, None, None, None]
    scores = jnp.where(mask, scores, jnp.float32(NEG_INF))
    attn = jax.nn.softmax(scores, axis=-1)
    o = jnp.einsum("bhqk,bhkd->bhqd", attn.astype(md), vh.astype(md),
                   preferred_element_type=jnp.float32)
    o = o.transpose(0, 2, 1, 3).reshape(B, S, H)
    attn_out = mm(o, params["wo"]) + params["bo"]

    z1 = _layer_norm(x + attn_out, params["g1"], params["be1"])
    h1 = jnp.maximum(mm(z1, params["w1"]) + params["b1"], 0.0)
    y2 = mm(h1, params["w2"]) + params["b2"]
    return _layer_norm(z1 + y2, params["g2"], params["be2"])


def make_params(key, num_hiddens, ffn_num_hiddens):
    ks = jax.random.split(key, 8)
    H, F = num_hiddens, ffn_num_hiddens
    s = 0.1
    return {
        "wq": jax.random.normal(ks[0], (H, H), jnp.float32) * s,
        "wk": jax.random.normal(ks[1], (H, H), jnp.float32) * s,
        "wv": jax.random.normal(ks[2], (H, H), jnp.float32) * s,
        "wo": jax.random.normal(ks[3], (H, H), jnp.float32) * s,
        "bq": jax.random.normal(ks[4], (1, H), jnp.float32) * s,
        "bk": jnp.zeros((1, H), jnp.float32),
        "bv": jnp.zeros((1, H), jnp.float32),
        "bo": jnp.zeros((1, H), jnp.float32),
        "w1": jax.random.normal(ks[5], (H, F), jnp.float32) * s,
        "b1": jax.random.normal(ks[6], (1, F), jnp.float32) * s,
        "w2": jax.random.normal(ks[7], (F, H), jnp.float32) * s,
        "b2": jnp.zeros((1, H), jnp.float32),
        "g1": jnp.ones((1, H), jnp.float32),
        "be1": jnp.zeros((1, H), jnp.float32),
        "g2": jnp.ones((1, H), jnp.float32),
        "be2": jnp.zeros((1, H), jnp.float32),
    }


if __name__ == "__main__":
    # Small shapes consistent with the module's forward:
    B, S, H, FFN_H = 2, 8, 32, 64      # batch, seq, num_hiddens, ffn_num_hiddens
    key = jax.random.PRNGKey(0)
    kx, kp, kx2, kv2 = jax.random.split(key, 4)

    x = jax.random.normal(kx, (B, S, H), jnp.float32)
    valid_len = jnp.array([5, 8], dtype=jnp.int32)
    params = make_params(kp, H, FFN_H)

    out = jax.block_until_ready(encoder_block(x, valid_len, params))
    assert out.shape == (B, S, H)

    # Tight check vs a reference mirroring the kernel's bf16 matmul operands
    # (only scale-folding rounding / approx-reciprocal / accumulation order differ).
    ref_bf16 = encoder_block_ref(x, valid_len, params, matmul_dtype=jnp.bfloat16)
    assert jnp.allclose(out, ref_bf16, atol=2e-2, rtol=2e-2), \
        "mismatch vs bf16-matched reference"

    # Looser sanity check vs exact-f32 module semantics (tolerance reflects the
    # deliberate bf16 MXU operands + approx softmax reciprocal).
    ref_f32 = encoder_block_ref(x, valid_len, params, matmul_dtype=jnp.float32)
    assert jnp.allclose(out, ref_f32, atol=1.5e-1, rtol=1.5e-1), \
        "mismatch vs f32 reference"

    # Exercise the multi-grid-step path (weights revisited, valid_len read per
    # batch block, 'parallel' axis shardable across v7x's two TensorCores).
    B2 = 16
    x2 = jax.random.normal(kx2, (B2, S, H), jnp.float32)
    vl2 = jax.random.randint(kv2, (B2,), 1, S + 1, dtype=jnp.int32)
    out2 = jax.block_until_ready(encoder_block(x2, vl2, params, batch_block=8))
    ref2 = encoder_block_ref(x2, vl2, params, matmul_dtype=jnp.bfloat16)
    assert jnp.allclose(out2, ref2, atol=2e-2, rtol=2e-2), \
        "mismatch vs bf16-matched reference (multi-block grid)"

    print("KERNEL_OK")
</pallas_src>

<mosaic_0001>
module attributes {stable_mosaic.version = 11 : i64} {
  func.func @encoder_block_kernel(%arg0: i32, %arg1: memref<2xi32, #tpu.memory_space<smem>>, %arg2: memref<16x32xf32, #tpu.memory_space<vmem>>, %arg3: memref<12x32x8xbf16, #tpu.memory_space<vmem>>, %arg4: memref<12x1x8xf32, #tpu.memory_space<vmem>>, %arg5: memref<4x8x32xbf16, #tpu.memory_space<vmem>>, %arg6: memref<1x32xf32, #tpu.memory_space<vmem>>, %arg7: memref<1x32xf32, #tpu.memory_space<vmem>>, %arg8: memref<1x32xf32, #tpu.memory_space<vmem>>, %arg9: memref<32x64xbf16, #tpu.memory_space<vmem>>, %arg10: memref<1x64xf32, #tpu.memory_space<vmem>>, %arg11: memref<64x32xbf16, #tpu.memory_space<vmem>>, %arg12: memref<1x32xf32, #tpu.memory_space<vmem>>, %arg13: memref<1x32xf32, #tpu.memory_space<vmem>>, %arg14: memref<1x32xf32, #tpu.memory_space<vmem>>, %arg15: memref<16x32xf32, #tpu.memory_space<vmem>>) attributes {dimension_semantics = [#tpu.dimension_semantics<parallel>], iteration_bounds = array<i64: 1>, scalar_prefetch = 1 : i64, scratch_operands = 0 : i64, tpu.core_type = #tpu.core_type<tc>, window_params = [{transform_indices = @transform_0, window_bounds = array<i64: 16, 32>}, {pipeline_mode = #tpu.pipeline_mode<synchronous>, transform_indices = @transform_1, window_bounds = array<i64: 12, 32, 8>}, {pipeline_mode = #tpu.pipeline_mode<synchronous>, transform_indices = @transform_2, window_bounds = array<i64: 12, 1, 8>}, {pipeline_mode = #tpu.pipeline_mode<synchronous>, transform_indices = @transform_3, window_bounds = array<i64: 4, 8, 32>}, {pipeline_mode = #tpu.pipeline_mode<synchronous>, transform_indices = @transform_4, window_bounds = array<i64: 1, 32>}, {pipeline_mode = #tpu.pipeline_mode<synchronous>, transform_indices = @transform_5, window_bounds = array<i64: 1, 32>}, {pipeline_mode = #tpu.pipeline_mode<synchronous>, transform_indices = @transform_6, window_bounds = array<i64: 1, 32>}, {pipeline_mode = #tpu.pipeline_mode<synchronous>, transform_indices = @transform_7, window_bounds = array<i64: 32, 64>}, {pipeline_mode = #tpu.pipeline_mode<synchronous>, transform_indices = @transform_8, window_bounds = array<i64: 1, 64>}, {pipeline_mode = #tpu.pipeline_mode<synchronous>, transform_indices = @transform_9, window_bounds = array<i64: 64, 32>}, {pipeline_mode = #tpu.pipeline_mode<synchronous>, transform_indices = @transform_10, window_bounds = array<i64: 1, 32>}, {pipeline_mode = #tpu.pipeline_mode<synchronous>, transform_indices = @transform_11, window_bounds = array<i64: 1, 32>}, {pipeline_mode = #tpu.pipeline_mode<synchronous>, transform_indices = @transform_12, window_bounds = array<i64: 1, 32>}, {transform_indices = @transform_13, window_bounds = array<i64: 16, 32>}]} {
    %c0 = arith.constant 0 : index
    %c0_0 = arith.constant 0 : index
    %0 = vector.load %arg2[%c0, %c0_0] : memref<16x32xf32, #tpu.memory_space<vmem>>, vector<16x32xf32>
    %1 = arith.truncf %0 : vector<16x32xf32> to vector<16x32xbf16>
    %c2_i32 = arith.constant 2 : i32
    %2 = arith.muli %arg0, %c2_i32 : i32
    %3 = tpu.iota {dimensions = array<i32: 2>} : vector<1x1x8xi32>
    %c0_i32 = arith.constant 0 : i32
    %4 = arith.addi %2, %c0_i32 : i32
    %5 = arith.index_cast %4 : i32 to index
    %6 = memref.load %arg1[%5] : memref<2xi32, #tpu.memory_space<smem>>
    %7 = vector.broadcast %6 : i32 to vector<1x1x8xi32>
    %8 = arith.cmpi slt, %3, %7 : vector<1x1x8xi32>
    %cst = arith.constant 0.000000e+00 : f32
    %cst_1 = arith.constant -1.000000e+06 : f32
    %9 = vector.broadcast %cst : f32 to vector<1x1x8xf32>
    %10 = vector.broadcast %cst_1 : f32 to vector<1x1x8xf32>
    %11 = arith.select %8, %9, %10 : vector<1x1x8xi1>, vector<1x1x8xf32>
    %c1_i32 = arith.constant 1 : i32
    %12 = arith.addi %2, %c1_i32 : i32
    %13 = arith.index_cast %12 : i32 to index
    %14 = memref.load %arg1[%13] : memref<2xi32, #tpu.memory_space<smem>>
    %15 = vector.broadcast %14 : i32 to vector<1x1x8xi32>
    %16 = arith.cmpi slt, %3, %15 : vector<1x1x8xi32>
    %cst_2 = arith.constant 0.000000e+00 : f32
    %cst_3 = arith.constant -1.000000e+06 : f32
    %17 = vector.broadcast %cst_2 : f32 to vector<1x1x8xf32>
    %18 = vector.broadcast %cst_3 : f32 to vector<1x1x8xf32>
    %19 = arith.select %16, %17, %18 : vector<1x1x8xi1>, vector<1x1x8xf32>
    %20 = tpu.concatenate %11, %19 in 0 : vector<1x1x8xf32>, vector<1x1x8xf32> -> vector<2x1x8xf32>
    %c0_4 = arith.constant 0 : index
    %c0_5 = arith.constant 0 : index
    %c0_6 = arith.constant 0 : index
    %21 = vector.load %arg4[%c0_4, %c0_5, %c0_6] : memref<12x1x8xf32, #tpu.memory_space<vmem>>, vector<12x1x8xf32>
    %cst_7 = arith.constant 0.000000e+00 : f32
    %22 = vector.broadcast %cst_7 : f32 to vector<16x32xf32>
    %c0_8 = arith.constant 0 : index
    %c0_9 = arith.constant 0 : index
    %c0_10 = arith.constant 0 : index
    %23 = vector.load %arg3[%c0_8, %c0_9, %c0_10] : memref<12x32x8xbf16, #tpu.memory_space<vmem>>, vector<1x32x8xbf16>
    %24 = vector.shape_cast %23 : vector<1x32x8xbf16> to vector<32x8xbf16>
    %cst_11 = arith.constant dense<0.000000e+00> : vector<16x8xf32>
    %25 = tpu.matmul %1, %24, %cst_11 {dimension_numbers = #tpu.dot_dimension_numbers<[1], [0], [0], [1], [0, 0, 1, 1], [], []>} : vector<16x32xbf16>, vector<32x8xbf16>, vector<16x8xf32> -> vector<16x8xf32>
    %26 = vector.extract_strided_slice %21 {offsets = [0, 0, 0], sizes = [1, 1, 8], strides = [1, 1, 1]} : vector<12x1x8xf32> to vector<1x1x8xf32>
    %27 = vector.shape_cast %26 : vector<1x1x8xf32> to vector<1x8xf32>
    %28 = vector.broadcast %27 : vector<1x8xf32> to vector<16x8xf32>
    %29 = arith.addf %25, %28 : vector<16x8xf32>
    %c4 = arith.constant 4 : index
    %c0_12 = arith.constant 0 : index
    %c0_13 = arith.constant 0 : index
    %30 = vector.load %arg3[%c4, %c0_12, %c0_13] : memref<12x32x8xbf16, #tpu.memory_space<vmem>>, vector<1x32x8xbf16>
    %31 = vector.shape_cast %30 : vector<1x32x8xbf16> to vector<32x8xbf16>
    %cst_14 = arith.constant dense<0.000000e+00> : vector<16x8xf32>
    %32 = tpu.matmul %1, %31, %cst_14 {dimension_numbers = #tpu.dot_dimension_numbers<[1], [0], [0], [1], [0, 0, 1, 1], [], []>} : vector<16x32xbf16>, vector<32x8xbf16>, vector<16x8xf32> -> vector<16x8xf32>
    %33 = vector.extract_strided_slice %21 {offsets = [4, 0, 0], sizes = [1, 1, 8], strides = [1, 1, 1]} : vector<12x1x8xf32> to vector<1x1x8xf32>
    %34 = vector.shape_cast %33 : vector<1x1x8xf32> to vector<1x8xf32>
    %35 = vector.broadcast %34 : vector<1x8xf32> to vector<16x8xf32>
    %36 = arith.addf %32, %35 : vector<16x8xf32>
    %c8 = arith.constant 8 : index
    %c0_15 = arith.constant 0 : index
    %c0_16 = arith.constant 0 : index
    %37 = vector.load %arg3[%c8, %c0_15, %c0_16] : memref<12x32x8xbf16, #tpu.memory_space<vmem>>, vector<1x32x8xbf16>
    %38 = vector.shape_cast %37 : vector<1x32x8xbf16> to vector<32x8xbf16>
    %cst_17 = arith.constant dense<0.000000e+00> : vector<16x8xf32>
    %39 = tpu.matmul %1, %38, %cst_17 {dimension_numbers = #tpu.dot_dimension_numbers<[1], [0], [0], [1], [0, 0, 1, 1], [], []>} : vector<16x32xbf16>, vector<32x8xbf16>, vector<16x8xf32> -> vector<16x8xf32>
    %40 = vector.extract_strided_slice %21 {offsets = [8, 0, 0], sizes = [1, 1, 8], strides = [1, 1, 1]} : vector<12x1x8xf32> to vector<1x1x8xf32>
    %41 = vector.shape_cast %40 : vector<1x1x8xf32> to vector<1x8xf32>
    %42 = vector.broadcast %41 : vector<1x8xf32> to vector<16x8xf32>
    %43 = arith.addf %39, %42 : vector<16x8xf32>
    %44 = vector.shape_cast %29 : vector<16x8xf32> to vector<2x8x8xf32>
    %45 = arith.truncf %44 : vector<2x8x8xf32> to vector<2x8x8xbf16>
    %46 = vector.shape_cast %36 : vector<16x8xf32> to vector<2x8x8xf32>
    %47 = arith.truncf %46 : vector<2x8x8xf32> to vector<2x8x8xbf16>
    %48 = vector.shape_cast %43 : vector<16x8xf32> to vector<2x8x8xf32>
    %49 = arith.truncf %48 : vector<2x8x8xf32> to vector<2x8x8xbf16>
    "tpu.trace_start"() <{level = 10 : i32, message = "bqd,bkd->bqk"}> : () -> ()
    %cst_18 = arith.constant dense<0.000000e+00> : vector<2x8x8xf32>
    %50 = tpu.matmul %45, %47, %cst_18 {dimension_numbers = #tpu.dot_dimension_numbers<[2], [2], [1], [1], [0, 0, 0, 1, 1, 1], [0], [0]>} : vector<2x8x8xbf16>, vector<2x8x8xbf16>, vector<2x8x8xf32> -> vector<2x8x8xf32>
    "tpu.trace_stop"() : () -> ()
    %51 = vector.broadcast %20 : vector<2x1x8xf32> to vector<2x8x8xf32>
    %52 = arith.addf %50, %51 : vector<2x8x8xf32>
    %cst_19 = arith.constant dense<0xFF800000> : vector<2x8xf32>
    %53 = vector.multi_reduction <maximumf>, %52, %cst_19 [2] : vector<2x8x8xf32> to vector<2x8xf32>
    %54 = vector.shape_cast %53 : vector<2x8xf32> to vector<2x8x1xf32>
    %55 = vector.broadcast %54 : vector<2x8x1xf32> to vector<2x8x8xf32>
    %56 = arith.subf %52, %55 : vector<2x8x8xf32>
    %57 = math.exp %56 : vector<2x8x8xf32>
    %cst_20 = arith.constant dense<0.000000e+00> : vector<2x8xf32>
    %58 = vector.multi_reduction <add>, %57, %cst_20 [2] : vector<2x8x8xf32> to vector<2x8xf32>
    %59 = vector.shape_cast %58 : vector<2x8xf32> to vector<2x8x1xf32>
    %60 = tpu.reciprocal %59 {approx = true} : vector<2x8x1xf32> -> vector<2x8x1xf32>
    %61 = vector.broadcast %60 : vector<2x8x1xf32> to vector<2x8x8xf32>
    %62 = arith.mulf %57, %61 : vector<2x8x8xf32>
    %63 = arith.truncf %62 : vector<2x8x8xf32> to vector<2x8x8xbf16>
    "tpu.trace_start"() <{level = 10 : i32, message = "bqk,bkd->bqd"}> : () -> ()
    %cst_21 = arith.constant dense<0.000000e+00> : vector<2x8x8xf32>
    %64 = tpu.matmul %63, %49, %cst_21 {dimension_numbers = #tpu.dot_dimension_numbers<[2], [1], [1], [2], [0, 0, 0, 1, 1, 2], [0], [0]>} : vector<2x8x8xbf16>, vector<2x8x8xbf16>, vector<2x8x8xf32> -> vector<2x8x8xf32>
    "tpu.trace_stop"() : () -> ()
    %65 = vector.shape_cast %64 : vector<2x8x8xf32> to vector<16x8xf32>
    %66 = arith.truncf %65 : vector<16x8xf32> to vector<16x8xbf16>
    %c0_22 = arith.constant 0 : index
    %c0_23 = arith.constant 0 : index
    %c0_24 = arith.constant 0 : index
    %67 = vector.load %arg5[%c0_22, %c0_23, %c0_24] : memref<4x8x32xbf16, #tpu.memory_space<vmem>>, vector<1x8x32xbf16>
    %68 = vector.shape_cast %67 : vector<1x8x32xbf16> to vector<8x32xbf16>
    %cst_25 = arith.constant dense<0.000000e+00> : vector<16x32xf32>
    %69 = tpu.matmul %66, %68, %cst_25 {dimension_numbers = #tpu.dot_dimension_numbers<[1], [0], [0], [1], [0, 0, 1, 1], [], []>} : vector<16x8xbf16>, vector<8x32xbf16>, vector<16x32xf32> -> vector<16x32xf32>
    %70 = arith.addf %22, %69 : vector<16x32xf32>
    %c1 = arith.constant 1 : index
    %c0_26 = arith.constant 0 : index
    %c0_27 = arith.constant 0 : index
    %71 = vector.load %arg3[%c1, %c0_26, %c0_27] : memref<12x32x8xbf16, #tpu.memory_space<vmem>>, vector<1x32x8xbf16>
    %72 = vector.shape_cast %71 : vector<1x32x8xbf16> to vector<32x8xbf16>
    %cst_28 = arith.constant dense<0.000000e+00> : vector<16x8xf32>
    %73 = tpu.matmul %1, %72, %cst_28 {dimension_numbers = #tpu.dot_dimension_numbers<[1], [0], [0], [1], [0, 0, 1, 1], [], []>} : vector<16x32xbf16>, vector<32x8xbf16>, vector<16x8xf32> -> vector<16x8xf32>
    %74 = vector.extract_strided_slice %21 {offsets = [1, 0, 0], sizes = [1, 1, 8], strides = [1, 1, 1]} : vector<12x1x8xf32> to vector<1x1x8xf32>
    %75 = vector.shape_cast %74 : vector<1x1x8xf32> to vector<1x8xf32>
    %76 = vector.broadcast %75 : vector<1x8xf32> to vector<16x8xf32>
    %77 = arith.addf %73, %76 : vector<16x8xf32>
    %c5 = arith.constant 5 : index
    %c0_29 = arith.constant 0 : index
    %c0_30 = arith.constant 0 : index
    %78 = vector.load %arg3[%c5, %c0_29, %c0_30] : memref<12x32x8xbf16, #tpu.memory_space<vmem>>, vector<1x32x8xbf16>
    %79 = vector.shape_cast %78 : vector<1x32x8xbf16> to vector<32x8xbf16>
    %cst_31 = arith.constant dense<0.000000e+00> : vector<16x8xf32>
    %80 = tpu.matmul %1, %79, %cst_31 {dimension_numbers = #tpu.dot_dimension_numbers<[1], [0], [0], [1], [0, 0, 1, 1], [], []>} : vector<16x32xbf16>, vector<32x8xbf16>, vector<16x8xf32> -> vector<16x8xf32>
    %81 = vector.extract_strided_slice %21 {offsets = [5, 0, 0], sizes = [1, 1, 8], strides = [1, 1, 1]} : vector<12x1x8xf32> to vector<1x1x8xf32>
    %82 = vector.shape_cast %81 : vector<1x1x8xf32> to vector<1x8xf32>
    %83 = vector.broadcast %82 : vector<1x8xf32> to vector<16x8xf32>
    %84 = arith.addf %80, %83 : vector<16x8xf32>
    %c9 = arith.constant 9 : index
    %c0_32 = arith.constant 0 : index
    %c0_33 = arith.constant 0 : index
    %85 = vector.load %arg3[%c9, %c0_32, %c0_33] : memref<12x32x8xbf16, #tpu.memory_space<vmem>>, vector<1x32x8xbf16>
    %86 = vector.shape_cast %85 : vector<1x32x8xbf16> to vector<32x8xbf16>
    %cst_34 = arith.constant dense<0.000000e+00> : vector<16x8xf32>
    %87 = tpu.matmul %1, %86, %cst_34 {dimension_numbers = #tpu.dot_dimension_numbers<[1], [0], [0], [1], [0, 0, 1, 1], [], []>} : vector<16x32xbf16>, vector<32x8xbf16>, vector<16x8xf32> -> vector<16x8xf32>
    %88 = vector.extract_strided_slice %21 {offsets = [9, 0, 0], sizes = [1, 1, 8], strides = [1, 1, 1]} : vector<12x1x8xf32> to vector<1x1x8xf32>
    %89 = vector.shape_cast %88 : vector<1x1x8xf32> to vector<1x8xf32>
    %90 = vector.broadcast %89 : vector<1x8xf32> to vector<16x8xf32>
    %91 = arith.addf %87, %90 : vector<16x8xf32>
    %92 = vector.shape_cast %77 : vector<16x8xf32> to vector<2x8x8xf32>
    %93 = arith.truncf %92 : vector<2x8x8xf32> to vector<2x8x8xbf16>
    %94 = vector.shape_cast %84 : vector<16x8xf32> to vector<2x8x8xf32>
    %95 = arith.truncf %94 : vector<2x8x8xf32> to vector<2x8x8xbf16>
    %96 = vector.shape_cast %91 : vector<16x8xf32> to vector<2x8x8xf32>
    %97 = arith.truncf %96 : vector<2x8x8xf32> to vector<2x8x8xbf16>
    "tpu.trace_start"() <{level = 10 : i32, message = "bqd,bkd->bqk"}> : () -> ()
    %cst_35 = arith.constant dense<0.000000e+00> : vector<2x8x8xf32>
    %98 = tpu.matmul %93, %95, %cst_35 {dimension_numbers = #tpu.dot_dimension_numbers<[2], [2], [1], [1], [0, 0, 0, 1, 1, 1], [0], [0]>} : vector<2x8x8xbf16>, vector<2x8x8xbf16>, vector<2x8x8xf32> -> vector<2x8x8xf32>
    "tpu.trace_stop"() : () -> ()
    %99 = vector.broadcast %20 : vector<2x1x8xf32> to vector<2x8x8xf32>
    %100 = arith.addf %98, %99 : vector<2x8x8xf32>
    %cst_36 = arith.constant dense<0xFF800000> : vector<2x8xf32>
    %101 = vector.multi_reduction <maximumf>, %100, %cst_36 [2] : vector<2x8x8xf32> to vector<2x8xf32>
    %102 = vector.shape_cast %101 : vector<2x8xf32> to vector<2x8x1xf32>
    %103 = vector.broadcast %102 : vector<2x8x1xf32> to vector<2x8x8xf32>
    %104 = arith.subf %100, %103 : vector<2x8x8xf32>
    %105 = math.exp %104 : vector<2x8x8xf32>
    %cst_37 = arith.constant dense<0.000000e+00> : vector<2x8xf32>
    %106 = vector.multi_reduction <add>, %105, %cst_37 [2] : vector<2x8x8xf32> to vector<2x8xf32>
    %107 = vector.shape_cast %106 : vector<2x8xf32> to vector<2x8x1xf32>
    %108 = tpu.reciprocal %107 {approx = true} : vector<2x8x1xf32> -> vector<2x8x1xf32>
    %109 = vector.broadcast %108 : vector<2x8x1xf32> to vector<2x8x8xf32>
    %110 = arith.mulf %105, %109 : vector<2x8x8xf32>
    %111 = arith.truncf %110 : vector<2x8x8xf32> to vector<2x8x8xbf16>
    "tpu.trace_start"() <{level = 10 : i32, message = "bqk,bkd->bqd"}> : () -> ()
    %cst_38 = arith.constant dense<0.000000e+00> : vector<2x8x8xf32>
    %112 = tpu.matmul %111, %97, %cst_38 {dimension_numbers = #tpu.dot_dimension_numbers<[2], [1], [1], [2], [0, 0, 0, 1, 1, 2], [0], [0]>} : vector<2x8x8xbf16>, vector<2x8x8xbf16>, vector<2x8x8xf32> -> vector<2x8x8xf32>
    "tpu.trace_stop"() : () -> ()
    %113 = vector.shape_cast %112 : vector<2x8x8xf32> to vector<16x8xf32>
    %114 = arith.truncf %113 : vector<16x8xf32> to vector<16x8xbf16>
    %c1_39 = arith.constant 1 : index
    %c0_40 = arith.constant 0 : index
    %c0_41 = arith.constant 0 : index
    %115 = vector.load %arg5[%c1_39, %c0_40, %c0_41] : memref<4x8x32xbf16, #tpu.memory_space<vmem>>, vector<1x8x32xbf16>
    %116 = vector.shape_cast %115 : vector<1x8x32xbf16> to vector<8x32xbf16>
    %cst_42 = arith.constant dense<0.000000e+00> : vector<16x32xf32>
    %117 = tpu.matmul %114, %116, %cst_42 {dimension_numbers = #tpu.dot_dimension_numbers<[1], [0], [0], [1], [0, 0, 1, 1], [], []>} : vector<16x8xbf16>, vector<8x32xbf16>, vector<16x32xf32> -> vector<16x32xf32>
    %118 = arith.addf %70, %117 : vector<16x32xf32>
    %c2 = arith.constant 2 : index
    %c0_43 = arith.constant 0 : index
    %c0_44 = arith.constant 0 : index
    %119 = vector.load %arg3[%c2, %c0_43, %c0_44] : memref<12x32x8xbf16, #tpu.memory_space<vmem>>, vector<1x32x8xbf16>
    %120 = vector.shape_cast %119 : vector<1x32x8xbf16> to vector<32x8xbf16>
    %cst_45 = arith.constant dense<0.000000e+00> : vector<16x8xf32>
    %121 = tpu.matmul %1, %120, %cst_45 {dimension_numbers = #tpu.dot_dimension_numbers<[1], [0], [0], [1], [0, 0, 1, 1], [], []>} : vector<16x32xbf16>, vector<32x8xbf16>, vector<16x8xf32> -> vector<16x8xf32>
    %122 = vector.extract_strided_slice %21 {offsets = [2, 0, 0], sizes = [1, 1, 8], strides = [1, 1, 1]} : vector<12x1x8xf32> to vector<1x1x8xf32>
    %123 = vector.shape_cast %122 : vector<1x1x8xf32> to vector<1x8xf32>
    %124 = vector.broadcast %123 : vector<1x8xf32> to vector<16x8xf32>
    %125 = arith.addf %121, %124 : vector<16x8xf32>
    %c6 = arith.constant 6 : index
    %c0_46 = arith.constant 0 : index
    %c0_47 = arith.constant 0 : index
    %126 = vector.load %arg3[%c6, %c0_46, %c0_47] : memref<12x32x8xbf16, #tpu.memory_space<vmem>>, vector<1x32x8xbf16>
    %127 = vector.shape_cast %126 : vector<1x32x8xbf16> to vector<32x8xbf16>
    %cst_48 = arith.constant dense<0.000000e+00> : vector<16x8xf32>
    %128 = tpu.matmul %1, %127, %cst_48 {dimension_numbers = #tpu.dot_dimension_numbers<[1], [0], [0], [1], [0, 0, 1, 1], [], []>} : vector<16x32xbf16>, vector<32x8xbf16>, vector<16x8xf32> -> vector<16x8xf32>
    %129 = vector.extract_strided_slice %21 {offsets = [6, 0, 0], sizes = [1, 1, 8], strides = [1, 1, 1]} : vector<12x1x8xf32> to vector<1x1x8xf32>
    %130 = vector.shape_cast %129 : vector<1x1x8xf32> to vector<1x8xf32>
    %131 = vector.broadcast %130 : vector<1x8xf32> to vector<16x8xf32>
    %132 = arith.addf %128, %131 : vector<16x8xf32>
    %c10 = arith.constant 10 : index
    %c0_49 = arith.constant 0 : index
    %c0_50 = arith.constant 0 : index
    %133 = vector.load %arg3[%c10, %c0_49, %c0_50] : memref<12x32x8xbf16, #tpu.memory_space<vmem>>, vector<1x32x8xbf16>
    %134 = vector.shape_cast %133 : vector<1x32x8xbf16> to vector<32x8xbf16>
    %cst_51 = arith.constant dense<0.000000e+00> : vector<16x8xf32>
    %135 = tpu.matmul %1, %134, %cst_51 {dimension_numbers = #tpu.dot_dimension_numbers<[1], [0], [0], [1], [0, 0, 1, 1], [], []>} : vector<16x32xbf16>, vector<32x8xbf16>, vector<16x8xf32> -> vector<16x8xf32>
    %136 = vector.extract_strided_slice %21 {offsets = [10, 0, 0], sizes = [1, 1, 8], strides = [1, 1, 1]} : vector<12x1x8xf32> to vector<1x1x8xf32>
    %137 = vector.shape_cast %136 : vector<1x1x8xf32> to vector<1x8xf32>
    %138 = vector.broadcast %137 : vector<1x8xf32> to vector<16x8xf32>
    %139 = arith.addf %135, %138 : vector<16x8xf32>
    %140 = vector.shape_cast %125 : vector<16x8xf32> to vector<2x8x8xf32>
    %141 = arith.truncf %140 : vector<2x8x8xf32> to vector<2x8x8xbf16>
    %142 = vector.shape_cast %132 : vector<16x8xf32> to vector<2x8x8xf32>
    %143 = arith.truncf %142 : vector<2x8x8xf32> to vector<2x8x8xbf16>
    %144 = vector.shape_cast %139 : vector<16x8xf32> to vector<2x8x8xf32>
    %145 = arith.truncf %144 : vector<2x8x8xf32> to vector<2x8x8xbf16>
    "tpu.trace_start"() <{level = 10 : i32, message = "bqd,bkd->bqk"}> : () -> ()
    %cst_52 = arith.constant dense<0.000000e+00> : vector<2x8x8xf32>
    %146 = tpu.matmul %141, %143, %cst_52 {dimension_numbers = #tpu.dot_dimension_numbers<[2], [2], [1], [1], [0, 0, 0, 1, 1, 1], [0], [0]>} : vector<2x8x8xbf16>, vector<2x8x8xbf16>, vector<2x8x8xf32> -> vector<2x8x8xf32>
    "tpu.trace_stop"() : () -> ()
    %147 = vector.broadcast %20 : vector<2x1x8xf32> to vector<2x8x8xf32>
    %148 = arith.addf %146, %147 : vector<2x8x8xf32>
    %cst_53 = arith.constant dense<0xFF800000> : vector<2x8xf32>
    %149 = vector.multi_reduction <maximumf>, %148, %cst_53 [2] : vector<2x8x8xf32> to vector<2x8xf32>
    %150 = vector.shape_cast %149 : vector<2x8xf32> to vector<2x8x1xf32>
    %151 = vector.broadcast %150 : vector<2x8x1xf32> to vector<2x8x8xf32>
    %152 = arith.subf %148, %151 : vector<2x8x8xf32>
    %153 = math.exp %152 : vector<2x8x8xf32>
    %cst_54 = arith.constant dense<0.000000e+00> : vector<2x8xf32>
    %154 = vector.multi_reduction <add>, %153, %cst_54 [2] : vector<2x8x8xf32> to vector<2x8xf32>
    %155 = vector.shape_cast %154 : vector<2x8xf32> to vector<2x8x1xf32>
    %156 = tpu.reciprocal %155 {approx = true} : vector<2x8x1xf32> -> vector<2x8x1xf32>
    %157 = vector.broadcast %156 : vector<2x8x1xf32> to vector<2x8x8xf32>
    %158 = arith.mulf %153, %157 : vector<2x8x8xf32>
    %159 = arith.truncf %158 : vector<2x8x8xf32> to vector<2x8x8xbf16>
    "tpu.trace_start"() <{level = 10 : i32, message = "bqk,bkd->bqd"}> : () -> ()
    %cst_55 = arith.constant dense<0.000000e+00> : vector<2x8x8xf32>
    %160 = tpu.matmul %159, %145, %cst_55 {dimension_numbers = #tpu.dot_dimension_numbers<[2], [1], [1], [2], [0, 0, 0, 1, 1, 2], [0], [0]>} : vector<2x8x8xbf16>, vector<2x8x8xbf16>, vector<2x8x8xf32> -> vector<2x8x8xf32>
    "tpu.trace_stop"() : () -> ()
    %161 = vector.shape_cast %160 : vector<2x8x8xf32> to vector<16x8xf32>
    %162 = arith.truncf %161 : vector<16x8xf32> to vector<16x8xbf16>
    %c2_56 = arith.constant 2 : index
    %c0_57 = arith.constant 0 : index
    %c0_58 = arith.constant 0 : index
    %163 = vector.load %arg5[%c2_56, %c0_57, %c0_58] : memref<4x8x32xbf16, #tpu.memory_space<vmem>>, vector<1x8x32xbf16>
    %164 = vector.shape_cast %163 : vector<1x8x32xbf16> to vector<8x32xbf16>
    %cst_59 = arith.constant dense<0.000000e+00> : vector<16x32xf32>
    %165 = tpu.matmul %162, %164, %cst_59 {dimension_numbers = #tpu.dot_dimension_numbers<[1], [0], [0], [1], [0, 0, 1, 1], [], []>} : vector<16x8xbf16>, vector<8x32xbf16>, vector<16x32xf32> -> vector<16x32xf32>
    %166 = arith.addf %118, %165 : vector<16x32xf32>
    %c3 = arith.constant 3 : index
    %c0_60 = arith.constant 0 : index
    %c0_61 = arith.constant 0 : index
    %167 = vector.load %arg3[%c3, %c0_60, %c0_61] : memref<12x32x8xbf16, #tpu.memory_space<vmem>>, vector<1x32x8xbf16>
    %168 = vector.shape_cast %167 : vector<1x32x8xbf16> to vector<32x8xbf16>
    %cst_62 = arith.constant dense<0.000000e+00> : vector<16x8xf32>
    %169 = tpu.matmul %1, %168, %cst_62 {dimension_numbers = #tpu.dot_dimension_numbers<[1], [0], [0], [1], [0, 0, 1, 1], [], []>} : vector<16x32xbf16>, vector<32x8xbf16>, vector<16x8xf32> -> vector<16x8xf32>
    %170 = vector.extract_strided_slice %21 {offsets = [3, 0, 0], sizes = [1, 1, 8], strides = [1, 1, 1]} : vector<12x1x8xf32> to vector<1x1x8xf32>
    %171 = vector.shape_cast %170 : vector<1x1x8xf32> to vector<1x8xf32>
    %172 = vector.broadcast %171 : vector<1x8xf32> to vector<16x8xf32>
    %173 = arith.addf %169, %172 : vector<16x8xf32>
    %c7 = arith.constant 7 : index
    %c0_63 = arith.constant 0 : index
    %c0_64 = arith.constant 0 : index
    %174 = vector.load %arg3[%c7, %c0_63, %c0_64] : memref<12x32x8xbf16, #tpu.memory_space<vmem>>, vector<1x32x8xbf16>
    %175 = vector.shape_cast %174 : vector<1x32x8xbf16> to vector<32x8xbf16>
    %cst_65 = arith.constant dense<0.000000e+00> : vector<16x8xf32>
    %176 = tpu.matmul %1, %175, %cst_65 {dimension_numbers = #tpu.dot_dimension_numbers<[1], [0], [0], [1], [0, 0, 1, 1], [], []>} : vector<16x32xbf16>, vector<32x8xbf16>, vector<16x8xf32> -> vector<16x8xf32>
    %177 = vector.extract_strided_slice %21 {offsets = [7, 0, 0], sizes = [1, 1, 8], strides = [1, 1, 1]} : vector<12x1x8xf32> to vector<1x1x8xf32>
    %178 = vector.shape_cast %177 : vector<1x1x8xf32> to vector<1x8xf32>
    %179 = vector.broadcast %178 : vector<1x8xf32> to vector<16x8xf32>
    %180 = arith.addf %176, %179 : vector<16x8xf32>
    %c11 = arith.constant 11 : index
    %c0_66 = arith.constant 0 : index
    %c0_67 = arith.constant 0 : index
    %181 = vector.load %arg3[%c11, %c0_66, %c0_67] : memref<12x32x8xbf16, #tpu.memory_space<vmem>>, vector<1x32x8xbf16>
    %182 = vector.shape_cast %181 : vector<1x32x8xbf16> to vector<32x8xbf16>
    %cst_68 = arith.constant dense<0.000000e+00> : vector<16x8xf32>
    %183 = tpu.matmul %1, %182, %cst_68 {dimension_numbers = #tpu.dot_dimension_numbers<[1], [0], [0], [1], [0, 0, 1, 1], [], []>} : vector<16x32xbf16>, vector<32x8xbf16>, vector<16x8xf32> -> vector<16x8xf32>
    %184 = vector.extract_strided_slice %21 {offsets = [11, 0, 0], sizes = [1, 1, 8], strides = [1, 1, 1]} : vector<12x1x8xf32> to vector<1x1x8xf32>
    %185 = vector.shape_cast %184 : vector<1x1x8xf32> to vector<1x8xf32>
    %186 = vector.broadcast %185 : vector<1x8xf32> to vector<16x8xf32>
    %187 = arith.addf %183, %186 : vector<16x8xf32>
    %188 = vector.shape_cast %173 : vector<16x8xf32> to vector<2x8x8xf32>
    %189 = arith.truncf %188 : vector<2x8x8xf32> to vector<2x8x8xbf16>
    %190 = vector.shape_cast %180 : vector<16x8xf32> to vector<2x8x8xf32>
    %191 = arith.truncf %190 : vector<2x8x8xf32> to vector<2x8x8xbf16>
    %192 = vector.shape_cast %187 : vector<16x8xf32> to vector<2x8x8xf32>
    %193 = arith.truncf %192 : vector<2x8x8xf32> to vector<2x8x8xbf16>
    "tpu.trace_start"() <{level = 10 : i32, message = "bqd,bkd->bqk"}> : () -> ()
    %cst_69 = arith.constant dense<0.000000e+00> : vector<2x8x8xf32>
    %194 = tpu.matmul %189, %191, %cst_69 {dimension_numbers = #tpu.dot_dimension_numbers<[2], [2], [1], [1], [0, 0, 0, 1, 1, 1], [0], [0]>} : vector<2x8x8xbf16>, vector<2x8x8xbf16>, vector<2x8x8xf32> -> vector<2x8x8xf32>
    "tpu.trace_stop"() : () -> ()
    %195 = vector.broadcast %20 : vector<2x1x8xf32> to vector<2x8x8xf32>
    %196 = arith.addf %194, %195 : vector<2x8x8xf32>
    %cst_70 = arith.constant dense<0xFF800000> : vector<2x8xf32>
    %197 = vector.multi_reduction <maximumf>, %196, %cst_70 [2] : vector<2x8x8xf32> to vector<2x8xf32>
    %198 = vector.shape_cast %197 : vector<2x8xf32> to vector<2x8x1xf32>
    %199 = vector.broadcast %198 : vector<2x8x1xf32> to vector<2x8x8xf32>
    %200 = arith.subf %196, %199 : vector<2x8x8xf32>
    %201 = math.exp %200 : vector<2x8x8xf32>
    %cst_71 = arith.constant dense<0.000000e+00> : vector<2x8xf32>
    %202 = vector.multi_reduction <add>, %201, %cst_71 [2] : vector<2x8x8xf32> to vector<2x8xf32>
    %203 = vector.shape_cast %202 : vector<2x8xf32> to vector<2x8x1xf32>
    %204 = tpu.reciprocal %203 {approx = true} : vector<2x8x1xf32> -> vector<2x8x1xf32>
    %205 = vector.broadcast %204 : vector<2x8x1xf32> to vector<2x8x8xf32>
    %206 = arith.mulf %201, %205 : vector<2x8x8xf32>
    %207 = arith.truncf %206 : vector<2x8x8xf32> to vector<2x8x8xbf16>
    "tpu.trace_start"() <{level = 10 : i32, message = "bqk,bkd->bqd"}> : () -> ()
    %cst_72 = arith.constant dense<0.000000e+00> : vector<2x8x8xf32>
    %208 = tpu.matmul %207, %193, %cst_72 {dimension_numbers = #tpu.dot_dimension_numbers<[2], [1], [1], [2], [0, 0, 0, 1, 1, 2], [0], [0]>} : vector<2x8x8xbf16>, vector<2x8x8xbf16>, vector<2x8x8xf32> -> vector<2x8x8xf32>
    "tpu.trace_stop"() : () -> ()
    %209 = vector.shape_cast %208 : vector<2x8x8xf32> to vector<16x8xf32>
    %210 = arith.truncf %209 : vector<16x8xf32> to vector<16x8xbf16>
    %c3_73 = arith.constant 3 : index
    %c0_74 = arith.constant 0 : index
    %c0_75 = arith.constant 0 : index
    %211 = vector.load %arg5[%c3_73, %c0_74, %c0_75] : memref<4x8x32xbf16, #tpu.memory_space<vmem>>, vector<1x8x32xbf16>
    %212 = vector.shape_cast %211 : vector<1x8x32xbf16> to vector<8x32xbf16>
    %cst_76 = arith.constant dense<0.000000e+00> : vector<16x32xf32>
    %213 = tpu.matmul %210, %212, %cst_76 {dimension_numbers = #tpu.dot_dimension_numbers<[1], [0], [0], [1], [0, 0, 1, 1], [], []>} : vector<16x8xbf16>, vector<8x32xbf16>, vector<16x32xf32> -> vector<16x32xf32>
    %214 = arith.addf %166, %213 : vector<16x32xf32>
    %c0_77 = arith.constant 0 : index
    %c0_78 = arith.constant 0 : index
    %215 = vector.load %arg6[%c0_77, %c0_78] : memref<1x32xf32, #tpu.memory_space<vmem>>, vector<1x32xf32>
    %216 = vector.broadcast %215 : vector<1x32xf32> to vector<16x32xf32>
    %217 = arith.addf %214, %216 : vector<16x32xf32>
    %218 = arith.addf %0, %217 : vector<16x32xf32>
    %c0_79 = arith.constant 0 : index
    %c0_80 = arith.constant 0 : index
    %219 = vector.load %arg7[%c0_79, %c0_80] : memref<1x32xf32, #tpu.memory_space<vmem>>, vector<1x32xf32>
    %c0_81 = arith.constant 0 : index
    %c0_82 = arith.constant 0 : index
    %220 = vector.load %arg8[%c0_81, %c0_82] : memref<1x32xf32, #tpu.memory_space<vmem>>, vector<1x32xf32>
    %cst_83 = arith.constant dense<0.000000e+00> : vector<16xf32>
    %221 = vector.multi_reduction <add>, %218, %cst_83 [1] : vector<16x32xf32> to vector<16xf32>
    %222 = vector.shape_cast %221 : vector<16xf32> to vector<16x1xf32>
    %cst_84 = arith.constant 3.200000e+01 : f32
    %223 = vector.broadcast %cst_84 : f32 to vector<16x1xf32>
    %224 = arith.divf %222, %223 : vector<16x1xf32>
    %225 = vector.broadcast %224 : vector<16x1xf32> to vector<16x32xf32>
    %226 = arith.subf %218, %225 : vector<16x32xf32>
    %227 = arith.mulf %226, %226 : vector<16x32xf32>
    %cst_85 = arith.constant dense<0.000000e+00> : vector<16xf32>
    %228 = vector.multi_reduction <add>, %227, %cst_85 [1] : vector<16x32xf32> to vector<16xf32>
    %229 = vector.shape_cast %228 : vector<16xf32> to vector<16x1xf32>
    %cst_86 = arith.constant 3.200000e+01 : f32
    %230 = vector.broadcast %cst_86 : f32 to vector<16x1xf32>
    %231 = arith.divf %229, %230 : vector<16x1xf32>
    %232 = vector.broadcast %224 : vector<16x1xf32> to vector<16x32xf32>
    %233 = arith.subf %218, %232 : vector<16x32xf32>
    %cst_87 = arith.constant 9.99999974E-6 : f32
    %234 = vector.broadcast %cst_87 : f32 to vector<16x1xf32>
    %235 = arith.addf %231, %234 : vector<16x1xf32>
    %236 = math.rsqrt %235 : vector<16x1xf32>
    %237 = vector.broadcast %236 : vector<16x1xf32> to vector<16x32xf32>
    %238 = arith.mulf %233, %237 : vector<16x32xf32>
    %239 = vector.broadcast %219 : vector<1x32xf32> to vector<16x32xf32>
    %240 = arith.mulf %238, %239 : vector<16x32xf32>
    %241 = vector.broadcast %220 : vector<1x32xf32> to vector<16x32xf32>
    %242 = arith.addf %240, %241 : vector<16x32xf32>
    %243 = arith.truncf %242 : vector<16x32xf32> to vector<16x32xbf16>
    %c0_88 = arith.constant 0 : index
    %c0_89 = arith.constant 0 : index
    %244 = vector.load %arg9[%c0_88, %c0_89] : memref<32x64xbf16, #tpu.memory_space<vmem>>, vector<32x64xbf16>
    %cst_90 = arith.constant dense<0.000000e+00> : vector<16x64xf32>
    %245 = tpu.matmul %243, %244, %cst_90 {dimension_numbers = #tpu.dot_dimension_numbers<[1], [0], [0], [1], [0, 0, 1, 1], [], []>} : vector<16x32xbf16>, vector<32x64xbf16>, vector<16x64xf32> -> vector<16x64xf32>
    %c0_91 = arith.constant 0 : index
    %c0_92 = arith.constant 0 : index
    %246 = vector.load %arg10[%c0_91, %c0_92] : memref<1x64xf32, #tpu.memory_space<vmem>>, vector<1x64xf32>
    %247 = vector.broadcast %246 : vector<1x64xf32> to vector<16x64xf32>
    %248 = arith.addf %245, %247 : vector<16x64xf32>
    %cst_93 = arith.constant 0.000000e+00 : f32
    %249 = vector.broadcast %cst_93 : f32 to vector<16x64xf32>
    %250 = arith.maximumf %248, %249 : vector<16x64xf32>
    %251 = arith.truncf %250 : vector<16x64xf32> to vector<16x64xbf16>
    %c0_94 = arith.constant 0 : index
    %c0_95 = arith.constant 0 : index
    %252 = vector.load %arg11[%c0_94, %c0_95] : memref<64x32xbf16, #tpu.memory_space<vmem>>, vector<64x32xbf16>
    %cst_96 = arith.constant dense<0.000000e+00> : vector<16x32xf32>
    %253 = tpu.matmul %251, %252, %cst_96 {dimension_numbers = #tpu.dot_dimension_numbers<[1], [0], [0], [1], [0, 0, 1, 1], [], []>} : vector<16x64xbf16>, vector<64x32xbf16>, vector<16x32xf32> -> vector<16x32xf32>
    %c0_97 = arith.constant 0 : index
    %c0_98 = arith.constant 0 : index
    %254 = vector.load %arg12[%c0_97, %c0_98] : memref<1x32xf32, #tpu.memory_space<vmem>>, vector<1x32xf32>
    %255 = vector.broadcast %254 : vector<1x32xf32> to vector<16x32xf32>
    %256 = arith.addf %253, %255 : vector<16x32xf32>
    %257 = arith.addf %242, %256 : vector<16x32xf32>
    %c0_99 = arith.constant 0 : index
    %c0_100 = arith.constant 0 : index
    %258 = vector.load %arg13[%c0_99, %c0_100] : memref<1x32xf32, #tpu.memory_space<vmem>>, vector<1x32xf32>
    %c0_101 = arith.constant 0 : index
    %c0_102 = arith.constant 0 : index
    %259 = vector.load %arg14[%c0_101, %c0_102] : memref<1x32xf32, #tpu.memory_space<vmem>>, vector<1x32xf32>
    %cst_103 = arith.constant dense<0.000000e+00> : vector<16xf32>
    %260 = vector.multi_reduction <add>, %257, %cst_103 [1] : vector<16x32xf32> to vector<16xf32>
    %261 = vector.shape_cast %260 : vector<16xf32> to vector<16x1xf32>
    %cst_104 = arith.constant 3.200000e+01 : f32
    %262 = vector.broadcast %cst_104 : f32 to vector<16x1xf32>
    %263 = arith.divf %261, %262 : vector<16x1xf32>
    %264 = vector.broadcast %263 : vector<16x1xf32> to vector<16x32xf32>
    %265 = arith.subf %257, %264 : vector<16x32xf32>
    %266 = arith.mulf %265, %265 : vector<16x32xf32>
    %cst_105 = arith.constant dense<0.000000e+00> : vector<16xf32>
    %267 = vector.multi_reduction <add>, %266, %cst_105 [1] : vector<16x32xf32> to vector<16xf32>
    %268 = vector.shape_cast %267 : vector<16xf32> to vector<16x1xf32>
    %cst_106 = arith.constant 3.200000e+01 : f32
    %269 = vector.broadcast %cst_106 : f32 to vector<16x1xf32>
    %270 = arith.divf %268, %269 : vector<16x1xf32>
    %271 = vector.broadcast %263 : vector<16x1xf32> to vector<16x32xf32>
    %272 = arith.subf %257, %271 : vector<16x32xf32>
    %cst_107 = arith.constant 9.99999974E-6 : f32
    %273 = vector.broadcast %cst_107 : f32 to vector<16x1xf32>
    %274 = arith.addf %270, %273 : vector<16x1xf32>
    %275 = math.rsqrt %274 : vector<16x1xf32>
    %276 = vector.broadcast %275 : vector<16x1xf32> to vector<16x32xf32>
    %277 = arith.mulf %272, %276 : vector<16x32xf32>
    %278 = vector.broadcast %258 : vector<1x32xf32> to vector<16x32xf32>
    %279 = arith.mulf %277, %278 : vector<16x32xf32>
    %280 = vector.broadcast %259 : vector<1x32xf32> to vector<16x32xf32>
    %281 = arith.addf %279, %280 : vector<16x32xf32>
    %c0_108 = arith.constant 0 : index
    %c0_109 = arith.constant 0 : index
    %282 = vector.load %arg15[%c0_108, %c0_109] : memref<16x32xf32, #tpu.memory_space<vmem>>, vector<16x32xf32>
    tpu.vector_store %arg15[%c0_108, %c0_109], %281 {strides = array<i32>} : memref<16x32xf32, #tpu.memory_space<vmem>>, vector<16x32xf32>,
    return
  }
  func.func @transform_0(%arg0: i32, %arg1: memref<2xi32, #tpu.memory_space<smem>>) -> (i32, i32) {
    %c0_i32 = arith.constant 0 : i32
    %c0_i32_0 = arith.constant 0 : i32
    return %arg0, %c0_i32 : i32, i32
  }
  func.func @transform_1(%arg0: i32, %arg1: memref<2xi32, #tpu.memory_space<smem>>) -> (i32, i32, i32) {
    %c0_i32 = arith.constant 0 : i32
    %c0_i32_0 = arith.constant 0 : i32
    %c0_i32_1 = arith.constant 0 : i32
    %c0_i32_2 = arith.constant 0 : i32
    return %c0_i32, %c0_i32_0, %c0_i32_1 : i32, i32, i32
  }
  func.func @transform_2(%arg0: i32, %arg1: memref<2xi32, #tpu.memory_space<smem>>) -> (i32, i32, i32) {
    %c0_i32 = arith.constant 0 : i32
    %c0_i32_0 = arith.constant 0 : i32
    %c0_i32_1 = arith.constant 0 : i32
    %c0_i32_2 = arith.constant 0 : i32
    return %c0_i32, %c0_i32_0, %c0_i32_1 : i32, i32, i32
  }
  func.func @transform_3(%arg0: i32, %arg1: memref<2xi32, #tpu.memory_space<smem>>) -> (i32, i32, i32) {
    %c0_i32 = arith.constant 0 : i32
    %c0_i32_0 = arith.constant 0 : i32
    %c0_i32_1 = arith.constant 0 : i32
    %c0_i32_2 = arith.constant 0 : i32
    return %c0_i32, %c0_i32_0, %c0_i32_1 : i32, i32, i32
  }
  func.func @transform_4(%arg0: i32, %arg1: memref<2xi32, #tpu.memory_space<smem>>) -> (i32, i32) {
    %c0_i32 = arith.constant 0 : i32
    %c0_i32_0 = arith.constant 0 : i32
    %c0_i32_1 = arith.constant 0 : i32
    return %c0_i32, %c0_i32_0 : i32, i32
  }
  func.func @transform_5(%arg0: i32, %arg1: memref<2xi32, #tpu.memory_space<smem>>) -> (i32, i32) {
    %c0_i32 = arith.constant 0 : i32
    %c0_i32_0 = arith.constant 0 : i32
    %c0_i32_1 = arith.constant 0 : i32
    return %c0_i32, %c0_i32_0 : i32, i32
  }
  func.func @transform_6(%arg0: i32, %arg1: memref<2xi32, #tpu.memory_space<smem>>) -> (i32, i32) {
    %c0_i32 = arith.constant 0 : i32
    %c0_i32_0 = arith.constant 0 : i32
    %c0_i32_1 = arith.constant 0 : i32
    return %c0_i32, %c0_i32_0 : i32, i32
  }
  func.func @transform_7(%arg0: i32, %arg1: memref<2xi32, #tpu.memory_space<smem>>) -> (i32, i32) {
    %c0_i32 = arith.constant 0 : i32
    %c0_i32_0 = arith.constant 0 : i32
    %c0_i32_1 = arith.constant 0 : i32
    return %c0_i32, %c0_i32_0 : i32, i32
  }
  func.func @transform_8(%arg0: i32, %arg1: memref<2xi32, #tpu.memory_space<smem>>) -> (i32, i32) {
    %c0_i32 = arith.constant 0 : i32
    %c0_i32_0 = arith.constant 0 : i32
    %c0_i32_1 = arith.constant 0 : i32
    return %c0_i32, %c0_i32_0 : i32, i32
  }
  func.func @transform_9(%arg0: i32, %arg1: memref<2xi32, #tpu.memory_space<smem>>) -> (i32, i32) {
    %c0_i32 = arith.constant 0 : i32
    %c0_i32_0 = arith.constant 0 : i32
    %c0_i32_1 = arith.constant 0 : i32
    return %c0_i32, %c0_i32_0 : i32, i32
  }
  func.func @transform_10(%arg0: i32, %arg1: memref<2xi32, #tpu.memory_space<smem>>) -> (i32, i32) {
    %c0_i32 = arith.constant 0 : i32
    %c0_i32_0 = arith.constant 0 : i32
    %c0_i32_1 = arith.constant 0 : i32
    return %c0_i32, %c0_i32_0 : i32, i32
  }
  func.func @transform_11(%arg0: i32, %arg1: memref<2xi32, #tpu.memory_space<smem>>) -> (i32, i32) {
    %c0_i32 = arith.constant 0 : i32
    %c0_i32_0 = arith.constant 0 : i32
    %c0_i32_1 = arith.constant 0 : i32
    return %c0_i32, %c0_i32_0 : i32, i32
  }
  func.func @transform_12(%arg0: i32, %arg1: memref<2xi32, #tpu.memory_space<smem>>) -> (i32, i32) {
    %c0_i32 = arith.constant 0 : i32
    %c0_i32_0 = arith.constant 0 : i32
    %c0_i32_1 = arith.constant 0 : i32
    return %c0_i32, %c0_i32_0 : i32, i32
  }
  func.func @transform_13(%arg0: i32, %arg1: memref<2xi32, #tpu.memory_space<smem>>) -> (i32, i32) {
    %c0_i32 = arith.constant 0 : i32
    %c0_i32_0 = arith.constant 0 : i32
    return %arg0, %c0_i32 : i32, i32
  }
}

</mosaic_0001>

<bundles_post_ra>
// kernel: tpu_custom_call.1
= control target key start
LH: loop header
LB: loop body
LE: loop exit
PB: predicated region body
PF: predicated region fallthrough
CT: control target
= control target key end

     0   :  { %s1599_s16 = smov [#allocation3]   ;;  %s1996_s0 = inlined_call_operand.vmem [shape: s32[2], index: 0, kind: input, shape index: {}]   ;;  %s1997_s1 = inlined_call_operand.vmem [shape: f32[16,32], index: 1, kind: input, shape index: {}]   ;;  %s1998_s2 = inlined_call_operand.vmem [shape: bf16[12,32,8], index: 2, kind: input, shape index: {}]   ;;  %s1999_s3 = inlined_call_operand.vmem [shape: f32[12,1,8], index: 3, kind: input, shape index: {}]   ;;  %s2000_s4 = inlined_call_operand.vmem [shape: bf16[4,8,32], index: 4, kind: input, shape index: {}]   ;;  %s2001_s5 = inlined_call_operand.vmem [shape: f32[1,32], index: 5, kind: input, shape index: {}]   ;;  %s2002_s6 = inlined_call_operand.vmem [shape: f32[1,32], index: 6, kind: input, shape index: {}]   ;;  %s2003_s7 = inlined_call_operand.vmem [shape: f32[1,32], index: 7, kind: input, shape index: {}]   ;;  %s2004_s8 = inlined_call_operand.vmem [shape: bf16[32,64], index: 8, kind: input, shape index: {}]   ;;  %s2005_s9 = inlined_call_operand.vmem [shape: f32[1,64], index: 9, kind: input, shape index: {}]   ;;  %s2006_s10 = inlined_call_operand.vmem [shape: bf16[64,32], index: 10, kind: input, shape index: {}]   ;;  %s2007_s11 = inlined_call_operand.vmem [shape: f32[1,32], index: 11, kind: input, shape index: {}]   ;;  %s2008_s12 = inlined_call_operand.vmem [shape: f32[1,32], index: 12, kind: input, shape index: {}]   ;;  %s2009_s13 = inlined_call_operand.vmem [shape: f32[1,32], index: 13, kind: input, shape index: {}]   ;;  %s2010_s14 = inlined_call_operand.hbm [shape: f32[16,32], index: 14, kind: output, shape index: {}]  }
   0x1   :  { %s20_s15 = sshll.u32 %s1996_s0, 4  ;;  %s21_s15 = int_to_ptr.vmem [resolvable:$true] %s20_s15 }
   0x2   :  { %23 = dma.vmem_to_smem %s21_s15, 16, %s1599_s16, [#allocation2] }
   0x3   :  { %1595 = dma.done.wait [#allocation2], 16 }
   0x4   :  { %1596 = vsyncadd [#allocation2], 4294967280 }
   0x5   :  { %26 = sfence }
   0x6   :  { %v1463_v0 = vld [vmem:[%s1998_s2 + $0x8] sm:$0xff]  ;;  %v1462_v2 = vld [vmem:[%s1998_s2] sm:$0xff]  ;;  %vm101_vm0 = vcmask 261120  }
   0x7   :  { %v1465_v1 = vld [vmem:[%s1998_s2 + $0x48] sm:$0xff]  ;;  %v1464_v3 = vld [vmem:[%s1998_s2 + $0x40] sm:$0xff]  ;;  %111 = vmatpush.bf16.msra.mxu0 %v1463_v0 }
   0x8   :  { %v1698_v4 = vld [vmem:[%s1997_s1] sm:$0xff]  ;;  %145 = vmatpush.bf16.msra.mxu1 %v1465_v1  ;;  %v1703_v5 = vld [vmem:[%s1997_s1 + $0x8] sm:$0xff] }
   0x9   :  { %v1707_v6 = vpack.c.bf16 %v1703_v5, %v1698_v4 }
   0xb   :  { %112 = vmatpush.bf16.msra.mxu0 %v1462_v2 }
   0xc   :  { %146 = vmatpush.bf16.msra.mxu1 %v1464_v3 }
   0xd   :  { %27 = vsyncpa [#allocation5], 0  ;;  %v1499_v7 = vld [vmem:[%s1999_s3 + $0x4] ss:$0 sm:$0xff]  ;;  %v1498_v9 = vld [vmem:[%s1999_s3] ss:$0 sm:$0xff]  ;;  %v59_v27 = vlaneseq }
   0xe   :  { %1269 = vmatmul.msk.bf16.vlgmr.msra.gmra.mxu0 %vm101_vm0, %v1707_v6  ;;  %vm195_vm1 = vcmask 64512   ;;  %v1469_v13 = vld [vmem:[%s1998_s2 + $0x18] sm:$0xff]  ;;  %v1468_v16 = vld [vmem:[%s1998_s2 + $0x10] sm:$0xff]  ;;  %s61_s23 = sld [smem:[#allocation3]]  ;;  %v1600_v31 = vmov -1000000.0  }
   0xf   :  { %1282 = vmatmul.msk.bf16.vlgmr.msra.gmra.mxu1 %vm101_vm0, %v1707_v6  ;;  %v1471_v21 = vld [vmem:[%s1998_s2 + $0x58] sm:$0xff]  ;;  %v1470_v25 = vld [vmem:[%s1998_s2 + $0x50] sm:$0xff]  ;;  %s1260_s0 = sld [smem:[#allocation3 + $0x1]]  ;;  %v60_v28 = vand.u32 127, %v59_v27  ;;  %v1467_v42 = vld [vmem:[%s1998_s2 + $0x88] sm:$0xff]  ;;  %vm261_vm4 = vcmask 1043456  }
  0x10   :  { %179 = vmatpush.bf16.msra.mxu2 %v1467_v42  ;;  %v1466_v44 = vld [vmem:[%s1998_s2 + $0x80] sm:$0xff]  ;;  %vm1164_vm12 = vcmask 523264   ;;  %s1248_s29 = sshll.u32 %s2010_s14, 4  ;;  %s1249_s29 = int_to_ptr.hbm [resolvable:$true] %s1248_s29 }
  0x11   :  { %v1501_v46 = vld [vmem:[%s1999_s3 + $0x1] ss:$0 sm:$0xff]  ;;  %v1500_v48 = vld [vmem:[%s1999_s3 + $0x5] ss:$0 sm:$0xff] }
  0x14   :  { %v62_v29 = vstv %s61_s23  ;;  %180 = vmatpush.bf16.msra.mxu2 %v1466_v44 }
  0x15   :  { %v67_v30 = vstv %s1260_s0  ;;  %vm63_vm2 = vcmp.lt.s32.totalorder %v60_v28, %v62_v29 }
  0x16   :  { %vm68_vm3 = vcmp.lt.s32.totalorder %v60_v28, %v67_v30  ;;  %v64_v32 = vsel %vm63_vm2, 0.0, %v1600_v31 }
  0x17   :  { %v69_v33 = vsel %vm68_vm3, 0.0, %v1600_v31  ;;  %v1739_v34 = vperm.slane %v64_v32, 0  ;;  %1295 = vmatmul.msk.bf16.vlgmr.msra.gmra.mxu2 %vm101_vm0, %v1707_v6 }
  0x18   :  { %v1741_v35 = vperm.slane %v69_v33, 0 }
  0x8b   :  { %v114_v11 = vpop.f32.mrf.mxu0 }
  0x8c   :  { %v148_v8 = vpop.f32.mrf.mxu1  ;;  %v115_v14 = vadd.f32 %v1498_v9, %v114_v11 }
  0x8d   :  { %v149_v10 = vadd.f32 %v1499_v7, %v148_v8  ;;  %v1502_v8 = vld [vmem:[%s1999_s3 + $0x8] ss:$0 sm:$0xff] }
  0x8e   :  { %v187_v18 = vpack.c.bf16 %v115_v14, %v115_v14 }
  0x8f   :  { %v189_v12 = vpack.c.bf16 %v149_v10, %v149_v10 }
  0x91   :  { %v200_v15 = vsel %vm195_vm1, %v189_v12, 0 }
  0x92   :  { %209 = vmatpush.bf16.xpose.msra.mxu3 %v200_v15 }
  0x93   :  { %v116_v22 = vpop.f32.mrf.mxu0 }
  0x94   :  { %v150_v17 = vpop.f32.mrf.mxu1  ;;  %v117_v24 = vadd.f32 %v1498_v9, %v116_v22 }
  0x95   :  { %v151_v19 = vadd.f32 %v1499_v7, %v150_v17 }
  0x96   :  { %v188_v26 = vpack.c.bf16 %v117_v24, %v117_v24 }
  0x97   :  { %v190_v20 = vpack.c.bf16 %v151_v19, %v151_v19 }
  0x99   :  { %1296 = vmatmul.msk.bf16.vlgmr.msra.gmra.mxu3 %vm195_vm1, %v187_v18  ;;  %v219_v23 = vsel %vm195_vm1, %v190_v20, 0 }
  0x9a   :  { %325 = vmatpush.bf16.msrb.mxu3 %v1469_v13  ;;  %228 = vmatpush.bf16.xpose.msrb.mxu0 %v219_v23  ;;  %v182_v9 = vpop.f32.mrf.mxu2  ;;  %v1473_v23 = vld [vmem:[%s1998_s2 + $0x98] sm:$0xff] }
  0x9b   :  { %v183_v10 = vadd.f32 %v1502_v8, %v182_v9 }
  0x9d   :  { %v191_v11 = vpack.c.bf16 %v183_v10, %v183_v10 }
  0x9e   :  { %326 = vmatpush.bf16.msrb.mxu3 %v1468_v16 }
  0x9f   :  { %v263_v12 = vsel %vm261_vm4, %v191_v11, 0  ;;  %v1477_v11 = vld [vmem:[%s1998_s2 + $0x68] sm:$0xff] }
  0xa0   :  { %272 = vmatpush.bf16.msrb.mxu1 %v263_v12  ;;  %v1476_v12 = vld [vmem:[%s1998_s2 + $0x60] sm:$0xff] }
  0xa1   :  { %1297 = vmatmul.msk.bf16.vlgmr.msrb.gmra.mxu0 %vm195_vm1, %v188_v26 }
  0xa2   :  { %359 = vmatpush.bf16.msra.mxu0 %v1471_v21  ;;  %v184_v14 = vpop.f32.mrf.mxu2 }
  0xa3   :  { %v185_v15 = vadd.f32 %v1502_v8, %v184_v14  ;;  %v1474_v14 = vld [vmem:[%s1998_s2 + $0x20] sm:$0xff] }
  0xa4   :  { %393 = vmatpush.bf16.msra.mxu1 %v1473_v23 }
  0xa5   :  { %v192_v16 = vpack.c.bf16 %v185_v15, %v185_v15 }
  0xa6   :  { %360 = vmatpush.bf16.msra.mxu0 %v1470_v25  ;;  %v1472_v25 = vld [vmem:[%s1998_s2 + $0x90] sm:$0xff] }
  0xa7   :  { %v282_v18 = vsel %vm261_vm4, %v192_v16, 0 }
  0xa8   :  { %291 = vmatpush.bf16.msrb.mxu2 %v282_v18  ;;  %394 = vmatpush.bf16.msra.mxu1 %v1472_v25 }
  0xa9   :  { %1312 = vmatmul.msk.bf16.vlgmr.msrb.gmra.mxu3 %vm101_vm0, %v1707_v6 }
  0xb1   :  { %1325 = vmatmul.msk.bf16.vlgmr.msra.gmra.mxu0 %vm101_vm0, %v1707_v6 }
 0x11c   :  { %v211_v36 = vpop.f32.mrf.mxu3 }
 0x11d   :  { %v212_v37 = vadd.f32 %v211_v36, %v1739_v34 }
 0x11e   :  { %v230_v38 = vpop.f32.mrf.mxu0 }
 0x11f   :  { %v231_v39 = vadd.f32 %v230_v38, %v1741_v35  ;;  %v234_v40 = vsel %vm195_vm1, %v212_v37, -inf }
 0x120   :  { %235 = vmax.xlane.f32.xlu1 %v234_v40 }
 0x121   :  { %v237_v41 = vsel %vm195_vm1, %v231_v39, -inf }
 0x122   :  { %238 = vmax.xlane.f32.xlu0 %v237_v41  ;;  %v298_v41 = vld [vmem:[%s2000_s4] sm:$0xf] }
 0x123   :  { %v534_v42 = vsel %vm261_vm4, %v298_v41, 0 }
 0x124   :  { %v213_v43 = vpop.f32.mrf.mxu3 }
 0x126   :  { %v232_v45 = vpop.f32.mrf.mxu0 }
 0x12c   :  { %v328_v47 = vpop.f32.mrf.mxu3 }
 0x12d   :  { %v1761_v49 = vadd.f32 %v1501_v46, %v328_v47  ;;  %v1503_v47 = vld [vmem:[%s1999_s3 + $0x9] ss:$0 sm:$0xff] }
 0x12e   :  { %v362_v50 = vpop.f32.mrf.mxu0 }
 0x12f   :  { %v363_v51 = vadd.f32 %v1500_v48, %v362_v50  ;;  %v401_v33 = vpack.c.bf16 %v1761_v49, %v1761_v49 }
 0x131   :  { %v403_v13 = vpack.c.bf16 %v363_v51, %v363_v51 }
 0x133   :  { %v411_v17 = vsel %vm195_vm1, %v403_v13, 0  ;;  %v1475_v13 = vld [vmem:[%s1998_s2 + $0x28] sm:$0xff] }
 0x134   :  { %v330_v54 = vpop.f32.mrf.mxu3  ;;  %420 = vmatpush.bf16.xpose.msra.mxu2 %v411_v17 }
 0x135   :  { %v331_v57 = vadd.f32 %v1501_v46, %v330_v54 }
 0x136   :  { %v364_v52 = vpop.f32.mrf.mxu0 }
 0x137   :  { %v365_v53 = vadd.f32 %v1500_v48, %v364_v52  ;;  %v402_v58 = vpack.c.bf16 %v331_v57, %v331_v57 }
 0x139   :  { %v404_v55 = vpack.c.bf16 %v365_v53, %v365_v53 }
 0x13b   :  { %v430_v56 = vsel %vm195_vm1, %v404_v55, 0 }
 0x13c   :  { %439 = vmatpush.bf16.xpose.msra.mxu3 %v430_v56 }
 0x143   :  { %1340 = vmatmul.msk.bf16.vlgmr.msra.gmra.mxu3 %vm195_vm1, %v402_v58 }
 0x144   :  { %543 = vmatpush.bf16.msrb.mxu3 %v534_v42  ;;  %v1479_v42 = vld [vmem:[%s1998_s2 + $0xa8] sm:$0xff] }
 0x193   :  { %v236_v59 = vpop.xlane.xlu1 %235 }
 0x194   :  { %v240_v60 = vsub.f32 %v212_v37, %v236_v59 }
 0x195   :  { %v239_v61 = vpop.xlane.xlu0 %238 }
 0x196   :  { %v242_v62 = vmul.f32 1.442695, %v240_v60  ;;  %v241_v63 = vsub.f32 %v231_v39, %v239_v61 }
 0x198   :  { %1517 = vpow2.f32 %v242_v62  ;;  %v244_v0 = vmul.f32 1.442695, %v241_v63 }
 0x19a   :  { %1519 = vpow2.f32 %v244_v0 }
 0x19e   :  { %v1518_v1 = vpop.eup %1517 }
 0x19f   :  { %v246_v2 = vsel %vm195_vm1, %v1518_v1, 0.0 }
 0x1a0   :  { %v1520_v3 = vpop.eup %1519  ;;  %247 = vadd.xlane.f32.xlu1 %v246_v2 }
 0x1a1   :  { %v249_v7 = vsel %vm195_vm1, %v1520_v3, 0.0 }
 0x1a2   :  { %250 = vadd.xlane.f32.xlu0 %v249_v7 }
 0x1c6   :  { %v441_v19 = vpop.f32.mrf.mxu3 }
 0x1c7   :  { %v442_v20 = vadd.f32 %v441_v19, %v1741_v35  ;;  %v1343_v19 = vld [vmem:[%s2000_s4 + $0x4] sm:$0xf] }
 0x1c9   :  { %v448_v21 = vsel %vm195_vm1, %v442_v20, -inf }
 0x1ca   :  { %449 = vmax.xlane.f32.xlu2 %v448_v21 }
 0x1ce   :  { %v443_v22 = vpop.f32.mrf.mxu3 }
 0x1cf   :  { %v1504_v22 = vld [vmem:[%s1999_s3 + $0x6] ss:$0 sm:$0xff] }
 0x213   :  { %v248_v24 = vpop.xlane.xlu1 %247 }
 0x214   :  { %1521 = vrcp.f32 %v248_v24 }
 0x215   :  { %v251_v26 = vpop.xlane.xlu0 %250 }
 0x216   :  { %1523 = vrcp.f32 %v251_v26 }
 0x21a   :  { %v1522_v27 = vpop.eup %1521 }
 0x21b   :  { %v254_v28 = vmul.f32 %v1522_v27, %v1518_v1 }
 0x21c   :  { %v1524_v29 = vpop.eup %1523 }
 0x21d   :  { %v255_v30 = vmul.f32 %v1524_v29, %v1520_v3  ;;  %v256_v31 = vpack.c.bf16 %v254_v28, %v254_v28 }
 0x21f   :  { %1298 = vmatmul.msk.bf16.vlgmr.msrb.gmra.mxu1 %vm195_vm1, %v256_v31  ;;  %v257_v32 = vpack.c.bf16 %v255_v30, %v255_v30 }
 0x221   :  { %1299 = vmatmul.msk.bf16.vlgmr.msrb.gmra.mxu2 %vm195_vm1, %v257_v32 }
 0x22f   :  { %1338 = vmatmul.msk.bf16.vlgmr.msra.gmra.mxu1 %vm101_vm0, %v1707_v6 }
 0x231   :  { %1339 = vmatmul.msk.bf16.vlgmr.msra.gmra.mxu2 %vm195_vm1, %v401_v33  ;;  %v1505_v33 = vld [vmem:[%s1999_s3 + $0x2] ss:$0 sm:$0xff] }
 0x23d   :  { %v450_v36 = vpop.xlane.xlu2 %449 }
 0x23e   :  { %v452_v37 = vsub.f32 %v442_v20, %v450_v36  ;;  %v514_v20 = vsel %vm261_vm4, %v1343_v19, 0 }
 0x23f   :  { %523 = vmatpush.bf16.msrb.mxu2 %v514_v20 }
 0x240   :  { %v455_v38 = vmul.f32 1.442695, %v452_v37 }
 0x242   :  { %1525 = vpow2.f32 %v455_v38 }
 0x243   :  { %644 = vmatpush.bf16.msra.mxu2 %v1479_v42 }
 0x248   :  { %v1526_v39 = vpop.eup %1525 }
 0x249   :  { %v460_v40 = vsel %vm195_vm1, %v1526_v39, 0.0 }
 0x24a   :  { %461 = vadd.xlane.f32.xlu0 %v460_v40 }
 0x29c   :  { %v274_v43 = vpop.f32.mrf.mxu1 }
 0x2a4   :  { %v276_v44 = vpop.f32.mrf.mxu1  ;;  %v293_v45 = vpop.f32.mrf.mxu2 }
 0x2a5   :  { %v297_v46 = vpack.c.bf16 %v293_v45, %v274_v43  ;;  %v1478_v43 = vld [vmem:[%s1998_s2 + $0xa0] sm:$0xff] }
 0x2a6   :  { %645 = vmatpush.bf16.msra.mxu2 %v1478_v43 }
 0x2a7   :  { %1345 = vmatmul.msk.bf16.vlgmr.msrb.gmra.mxu3 %vm195_vm1, %v297_v46 }
 0x2ac   :  { %v295_v48 = vpop.f32.mrf.mxu2  ;;  %v396_v49 = vpop.f32.mrf.mxu1 }
 0x2ad   :  { %v397_v50 = vadd.f32 %v1503_v47, %v396_v49 }
 0x2af   :  { %v405_v51 = vpack.c.bf16 %v397_v50, %v397_v50 }
 0x2b1   :  { %v473_v52 = vsel %vm261_vm4, %v405_v51, 0 }
 0x2b2   :  { %482 = vmatpush.bf16.msrb.mxu0 %v473_v52 }
 0x2b4   :  { %v422_v53 = vpop.f32.mrf.mxu2  ;;  %v398_v54 = vpop.f32.mrf.mxu1 }
 0x2b5   :  { %v423_v55 = vadd.f32 %v422_v53, %v1739_v34  ;;  %v399_v56 = vadd.f32 %v1503_v47, %v398_v54 }
 0x2b6   :  { %576 = vmatpush.bf16.msra.mxu0 %v1475_v13 }
 0x2b7   :  { %v445_v57 = vsel %vm195_vm1, %v423_v55, -inf  ;;  %v406_v58 = vpack.c.bf16 %v399_v56, %v399_v56  ;;  %v1506_v56 = vld [vmem:[%s1999_s3 + $0xa] ss:$0 sm:$0xff] }
 0x2b8   :  { %446 = vmax.xlane.f32.xlu2 %v445_v57 }
 0x2b9   :  { %v492_v59 = vsel %vm261_vm4, %v406_v58, 0 }
 0x2ba   :  { %501 = vmatpush.bf16.msrb.mxu1 %v492_v59  ;;  %577 = vmatpush.bf16.msra.mxu0 %v1474_v14  ;;  %v1483_v14 = vld [vmem:[%s1998_s2 + $0x78] sm:$0xff] }
 0x2bc   :  { %v424_v60 = vpop.f32.mrf.mxu2 }
 0x2bd   :  { %v462_v61 = vpop.xlane.xlu0 %461 }
 0x2be   :  { %1527 = vrcp.f32 %v462_v61  ;;  %610 = vmatpush.bf16.msra.mxu1 %v1477_v11 }
 0x2c2   :  { %611 = vmatpush.bf16.msra.mxu1 %v1476_v12 }
 0x2c4   :  { %v1528_v62 = vpop.eup %1527 }
 0x2c5   :  { %v466_v63 = vmul.f32 %v1528_v62, %v1526_v39 }
 0x2c7   :  { %v468_v0 = vpack.c.bf16 %v466_v63, %v466_v63 }
 0x2c9   :  { %1342 = vmatmul.msk.bf16.vlgmr.msrb.gmra.mxu1 %vm195_vm1, %v468_v0 }
 0x2d9   :  { %1371 = vmatmul.msk.bf16.vlgmr.msra.gmra.mxu1 %vm101_vm0, %v1707_v6 }
 0x32a   :  { %v1841_v44 = vpop.f32.mrf.mxu3 }
 0x32b   :  { %v447_v1 = vpop.xlane.xlu2 %446 }
 0x32c   :  { %v451_v2 = vsub.f32 %v423_v55, %v447_v1 }
 0x32e   :  { %v453_v3 = vmul.f32 1.442695, %v451_v2 }
 0x330   :  { %1529 = vpow2.f32 %v453_v3 }
 0x332   :  { %v1845_v45 = vpop.f32.mrf.mxu3 }
 0x336   :  { %v1530_v7 = vpop.eup %1529 }
 0x337   :  { %v457_v8 = vsel %vm195_vm1, %v1530_v7, 0.0 }
 0x338   :  { %458 = vadd.xlane.f32.xlu1 %v457_v8 }
 0x346   :  { %v503_v9 = vpop.f32.mrf.mxu1 }
 0x34e   :  { %v505_v10 = vpop.f32.mrf.mxu1 }
 0x356   :  { %v613_v21 = vpop.f32.mrf.mxu1 }
 0x357   :  { %v614_v23 = vadd.f32 %v1504_v22, %v613_v21 }
 0x359   :  { %v654_v24 = vpack.c.bf16 %v614_v23, %v614_v23 }
 0x35b   :  { %v662_v25 = vsel %vm195_vm1, %v654_v24, 0 }
 0x35c   :  { %671 = vmatpush.bf16.xpose.msra.mxu3 %v662_v25 }
 0x35e   :  { %v615_v26 = vpop.f32.mrf.mxu1 }
 0x35f   :  { %v616_v27 = vadd.f32 %v1504_v22, %v615_v26  ;;  %v1389_v26 = vld [vmem:[%s2000_s4 + $0x8] sm:$0xf] }
 0x361   :  { %v655_v28 = vpack.c.bf16 %v616_v27, %v616_v27  ;;  %v765_v27 = vsel %vm261_vm4, %v1389_v26, 0 }
 0x363   :  { %v681_v29 = vsel %vm195_vm1, %v655_v28, 0 }
 0x364   :  { %774 = vmatpush.bf16.msrb.mxu3 %v765_v27 }
 0x3ab   :  { %v459_v15 = vpop.xlane.xlu1 %458 }
 0x3ac   :  { %1531 = vrcp.f32 %v459_v15  ;;  %v1482_v15 = vld [vmem:[%s1998_s2 + $0x70] sm:$0xff] }
 0x3b2   :  { %v1532_v16 = vpop.eup %1531 }
 0x3b3   :  { %v465_v17 = vmul.f32 %v1532_v16, %v1530_v7  ;;  %v1481_v16 = vld [vmem:[%s1998_s2 + $0x38] sm:$0xff] }
 0x3b5   :  { %v467_v18 = vpack.c.bf16 %v465_v17, %v465_v17  ;;  %v1480_v17 = vld [vmem:[%s1998_s2 + $0x30] sm:$0xff] }
 0x3b7   :  { %1341 = vmatmul.msk.bf16.vlgmr.msrb.gmra.mxu0 %vm195_vm1, %v467_v18 }
 0x3b8   :  { %690 = vmatpush.bf16.xpose.msrb.mxu0 %v681_v29 }
 0x3c7   :  { %1358 = vmatmul.msk.bf16.vlgmr.msra.gmra.mxu0 %vm101_vm0, %v1707_v6 }
 0x3c8   :  { %809 = vmatpush.bf16.msra.mxu0 %v1481_v16 }
 0x3cc   :  { %810 = vmatpush.bf16.msra.mxu0 %v1480_v17 }
 0x434   :  { %v484_v30 = vpop.f32.mrf.mxu0 }
 0x435   :  { %v507_v31 = vpack.c.bf16 %v503_v9, %v484_v30 }
 0x437   :  { %1344 = vmatmul.msk.bf16.vlgmr.msrb.gmra.mxu2 %vm195_vm1, %v507_v31 }
 0x43c   :  { %v486_v32 = vpop.f32.mrf.mxu0 }
 0x43d   :  { %v1507_v32 = vld [vmem:[%s1999_s3 + $0x7] ss:$0 sm:$0xff] }
 0x444   :  { %v579_v36 = vpop.f32.mrf.mxu0 }
 0x445   :  { %v580_v37 = vadd.f32 %v1505_v33, %v579_v36 }
 0x447   :  { %v652_v38 = vpack.c.bf16 %v580_v37, %v580_v37  ;;  %1384 = vmatmul.msk.bf16.vlgmr.msra.gmra.mxu2 %vm101_vm0, %v1707_v6 }
 0x449   :  { %1385 = vmatmul.msk.bf16.vlgmr.msra.gmra.mxu3 %vm195_vm1, %v652_v38  ;;  %v1508_v38 = vld [vmem:[%s1999_s3 + $0x3] ss:$0 sm:$0xff] }
 0x44c   :  { %v581_v39 = vpop.f32.mrf.mxu0 }
 0x44d   :  { %v582_v40 = vadd.f32 %v1505_v33, %v581_v39 }
 0x44f   :  { %v653_v41 = vpack.c.bf16 %v582_v40, %v582_v40 }
 0x451   :  { %1386 = vmatmul.msk.bf16.vlgmr.msrb.gmra.mxu0 %vm195_vm1, %v653_v41 }
 0x461   :  { %1403 = vmatmul.msk.bf16.vlgmr.msra.gmra.mxu0 %vm101_vm0, %v1707_v6 }
 0x4ba   :  { %v1851_v54 = vpop.f32.mrf.mxu2 }
 0x4c2   :  { %v1853_v55 = vpop.f32.mrf.mxu2 }
 0x4ca   :  { %v647_v57 = vpop.f32.mrf.mxu2 }
 0x4cb   :  { %v648_v59 = vadd.f32 %v1506_v56, %v647_v57  ;;  %v546_v57 = vadd.f32 %v1841_v44, %v1851_v54 }
 0x4cc   :  { %v673_v46 = vpop.f32.mrf.mxu3 }
 0x4cd   :  { %v674_v47 = vadd.f32 %v673_v46, %v1739_v34  ;;  %v656_v62 = vpack.c.bf16 %v648_v59, %v648_v59 }
 0x4ce   :  { %v692_v48 = vpop.f32.mrf.mxu0 }
 0x4cf   :  { %v693_v49 = vadd.f32 %v692_v48, %v1741_v35  ;;  %v696_v50 = vsel %vm195_vm1, %v674_v47, -inf  ;;  %v724_v1 = vsel %vm261_vm4, %v656_v62, 0 }
 0x4d0   :  { %697 = vmax.xlane.f32.xlu2 %v696_v50  ;;  %733 = vmatpush.bf16.msrb.mxu1 %v724_v1 }
 0x4d1   :  { %v699_v51 = vsel %vm195_vm1, %v693_v49, -inf }
 0x4d2   :  { %700 = vmax.xlane.f32.xlu0 %v699_v51  ;;  %v649_v3 = vpop.f32.mrf.mxu2 }
 0x4d3   :  { %v650_v7 = vadd.f32 %v1506_v56, %v649_v3  ;;  %v1484_v56 = vld [vmem:[%s1998_s2 + $0xb0] sm:$0xff] }
 0x4d4   :  { %v675_v52 = vpop.f32.mrf.mxu3  ;;  %843 = vmatpush.bf16.msra.mxu1 %v1483_v14 }
 0x4d5   :  { %v657_v8 = vpack.c.bf16 %v650_v7, %v650_v7 }
 0x4d6   :  { %v694_v53 = vpop.f32.mrf.mxu0 }
 0x4d7   :  { %v743_v11 = vsel %vm261_vm4, %v657_v8, 0  ;;  %v1485_v53 = vld [vmem:[%s1998_s2 + $0xb8] sm:$0xff] }
 0x4d8   :  { %752 = vmatpush.bf16.msrb.mxu2 %v743_v11  ;;  %844 = vmatpush.bf16.msra.mxu1 %v1482_v15 }
 0x4dc   :  { %877 = vmatpush.bf16.msra.mxu2 %v1485_v53 }
 0x4de   :  { %v812_v39 = vpop.f32.mrf.mxu0 }
 0x4df   :  { %v813_v42 = vadd.f32 %v1508_v38, %v812_v39  ;;  %v1510_v39 = vld [vmem:[%s2001_s5] ss:$0 sm:$0xff] }
 0x4e0   :  { %878 = vmatpush.bf16.msra.mxu2 %v1484_v56 }
 0x4e1   :  { %v885_v46 = vpack.c.bf16 %v813_v42, %v813_v42 }
 0x543   :  { %v698_v58 = vpop.xlane.xlu2 %697 }
 0x544   :  { %v702_v60 = vsub.f32 %v674_v47, %v698_v58 }
 0x545   :  { %v701_v61 = vpop.xlane.xlu0 %700 }
 0x546   :  { %v704_v63 = vmul.f32 1.442695, %v702_v60  ;;  %v703_v0 = vsub.f32 %v693_v49, %v701_v61  ;;  %v814_v49 = vpop.f32.mrf.mxu0  ;;  %v548_v60 = vadd.f32 %v1845_v45, %v1853_v55  ;;  %v1509_v45 = vld [vmem:[%s1999_s3 + $0xb] ss:$0 sm:$0xff] }
 0x547   :  { %v815_v51 = vadd.f32 %v1508_v38, %v814_v49 }
 0x548   :  { %1533 = vpow2.f32 %v704_v63  ;;  %v706_v2 = vmul.f32 1.442695, %v703_v0 }
 0x549   :  { %v886_v52 = vpack.c.bf16 %v815_v51, %v815_v51 }
 0x54a   :  { %1535 = vpow2.f32 %v706_v2 }
 0x54e   :  { %v1534_v9 = vpop.eup %1533 }
 0x54f   :  { %v708_v10 = vsel %vm195_vm1, %v1534_v9, 0.0 }
 0x550   :  { %v1536_v12 = vpop.eup %1535  ;;  %709 = vadd.xlane.f32.xlu1 %v708_v10 }
 0x551   :  { %v711_v13 = vsel %vm195_vm1, %v1536_v12, 0.0 }
 0x552   :  { %712 = vadd.xlane.f32.xlu2 %v711_v13 }
 0x5c3   :  { %v710_v18 = vpop.xlane.xlu1 %709 }
 0x5c4   :  { %1537 = vrcp.f32 %v710_v18 }
 0x5c5   :  { %v713_v19 = vpop.xlane.xlu2 %712 }
 0x5c6   :  { %1539 = vrcp.f32 %v713_v19 }
 0x5ca   :  { %v1538_v20 = vpop.eup %1537 }
 0x5cb   :  { %v716_v21 = vmul.f32 %v1538_v20, %v1534_v9 }
 0x5cc   :  { %v1540_v22 = vpop.eup %1539 }
 0x5cd   :  { %v718_v23 = vpack.c.bf16 %v716_v21, %v716_v21  ;;  %v717_v24 = vmul.f32 %v1540_v22, %v1536_v12 }
 0x5cf   :  { %v719_v25 = vpack.c.bf16 %v717_v24, %v717_v24  ;;  %1387 = vmatmul.msk.bf16.vlgmr.msrb.gmra.mxu1 %vm195_vm1, %v718_v23 }
 0x5d1   :  { %1388 = vmatmul.msk.bf16.vlgmr.msrb.gmra.mxu2 %vm195_vm1, %v719_v25 }
 0x5df   :  { %1416 = vmatmul.msk.bf16.vlgmr.msra.gmra.mxu1 %vm101_vm0, %v1707_v6 }
 0x5e1   :  { %1429 = vmatmul.msk.bf16.vlgmr.msra.gmra.mxu2 %vm101_vm0, %v1707_v6 }
 0x64c   :  { %v735_v28 = vpop.f32.mrf.mxu1 }
 0x654   :  { %v737_v29 = vpop.f32.mrf.mxu1  ;;  %v754_v30 = vpop.f32.mrf.mxu2 }
 0x655   :  { %v758_v31 = vpack.c.bf16 %v754_v30, %v735_v28  ;;  %v1434_v30 = vld [vmem:[%s2000_s4 + $0xc] sm:$0xf]  ;;  %s1604_s4 = smov 8  }
 0x657   :  { %1390 = vmatmul.msk.bf16.vlgmr.msrb.gmra.mxu3 %vm195_vm1, %v758_v31  ;;  %v998_v31 = vsel %vm261_vm4, %v1434_v30, 0 }
 0x65c   :  { %v756_v33 = vpop.f32.mrf.mxu2  ;;  %v846_v36 = vpop.f32.mrf.mxu1 }
 0x65d   :  { %v847_v37 = vadd.f32 %v1507_v32, %v846_v36 }
 0x65f   :  { %v887_v40 = vpack.c.bf16 %v847_v37, %v847_v37 }
 0x661   :  { %v895_v41 = vsel %vm195_vm1, %v887_v40, 0 }
 0x662   :  { %904 = vmatpush.bf16.xpose.msra.mxu3 %v895_v41 }
 0x664   :  { %v848_v43 = vpop.f32.mrf.mxu1  ;;  %v880_v55 = vpop.f32.mrf.mxu2 }
 0x665   :  { %v849_v47 = vadd.f32 %v1507_v32, %v848_v43  ;;  %v881_v8 = vadd.f32 %v1509_v45, %v880_v55  ;;  %v1486_v55 = vld [vmem:[%s2004_s8] sm:$0xff] }
 0x667   :  { %v888_v48 = vpack.c.bf16 %v849_v47, %v849_v47  ;;  %v889_v10 = vpack.c.bf16 %v881_v8, %v881_v8 }
 0x669   :  { %v914_v50 = vsel %vm195_vm1, %v888_v48, 0  ;;  %1430 = vmatmul.msk.bf16.vlgmr.msra.gmra.mxu3 %vm195_vm1, %v885_v46  ;;  %v957_v12 = vsel %vm261_vm4, %v889_v10, 0 }
 0x66a   :  { %923 = vmatpush.bf16.xpose.msrb.mxu0 %v914_v50  ;;  %966 = vmatpush.bf16.msrb.mxu1 %v957_v12 }
 0x66b   :  { %1007 = vmatpush.bf16.msrb.mxu3 %v998_v31 }
 0x66c   :  { %v882_v14 = vpop.f32.mrf.mxu2 }
 0x66d   :  { %v883_v15 = vadd.f32 %v1509_v45, %v882_v14 }
 0x66f   :  { %v890_v16 = vpack.c.bf16 %v883_v15, %v883_v15 }
 0x671   :  { %1431 = vmatmul.msk.bf16.vlgmr.msrb.gmra.mxu0 %vm195_vm1, %v886_v52  ;;  %v976_v19 = vsel %vm261_vm4, %v890_v16, 0  ;;  %v1601_v52 = vmov 32.0  }
 0x672   :  { %985 = vmatpush.bf16.msrb.mxu2 %v976_v19 }
 0x6da   :  { %v776_v58 = vpop.f32.mrf.mxu3 }
 0x6db   :  { %v1903_v59 = vadd.f32 %v776_v58, %v546_v57 }
 0x6e2   :  { %v778_v61 = vpop.f32.mrf.mxu3 }
 0x6e3   :  { %v1909_v62 = vadd.f32 %v778_v61, %v548_v60 }
 0x6ec   :  { %v906_v63 = vpop.f32.mrf.mxu3 }
 0x6ed   :  { %v907_v0 = vadd.f32 %v906_v63, %v1739_v34 }
 0x6ee   :  { %v925_v1 = vpop.f32.mrf.mxu0 }
 0x6ef   :  { %v926_v2 = vadd.f32 %v925_v1, %v1741_v35  ;;  %v929_v44 = vsel %vm195_vm1, %v907_v0, -inf }
 0x6f0   :  { %930 = vmax.xlane.f32.xlu1 %v929_v44 }
 0x6f1   :  { %v932_v54 = vsel %vm195_vm1, %v926_v2, -inf }
 0x6f2   :  { %933 = vmax.xlane.f32.xlu0 %v932_v54 }
 0x6f4   :  { %v908_v3 = vpop.f32.mrf.mxu3 }
 0x6f5   :  { %v1487_v3 = vld [vmem:[%s2004_s8 + $0x8] sm:$0xff] }
 0x6f6   :  { %v927_v6 = vpop.f32.mrf.mxu0  ;;  %1117 = vmatpush.bf16.msra.mxu0 %v1487_v3 }
 0x6fa   :  { %1118 = vmatpush.bf16.msra.mxu0 %v1486_v55 }
 0x763   :  { %v931_v7 = vpop.xlane.xlu1 %930 }
 0x764   :  { %v935_v9 = vsub.f32 %v907_v0, %v931_v7 }
 0x765   :  { %v934_v34 = vpop.xlane.xlu0 %933 }
 0x766   :  { %v937_v11 = vmul.f32 1.442695, %v935_v9  ;;  %v936_v35 = vsub.f32 %v926_v2, %v934_v34 }
 0x768   :  { %1541 = vpow2.f32 %v937_v11  ;;  %v939_v13 = vmul.f32 1.442695, %v936_v35 }
 0x76a   :  { %1543 = vpow2.f32 %v939_v13 }
 0x76e   :  { %v1542_v17 = vpop.eup %1541 }
 0x76f   :  { %v941_v18 = vsel %vm195_vm1, %v1542_v17, 0.0 }
 0x770   :  { %v1544_v20 = vpop.eup %1543  ;;  %942 = vadd.xlane.f32.xlu0 %v941_v18 }
 0x771   :  { %v944_v21 = vsel %vm195_vm1, %v1544_v20, 0.0 }
 0x772   :  { %945 = vadd.xlane.f32.xlu2 %v944_v21  ;;  %v1511_v21 = vld [vmem:[%s2002_s6] ss:$0 sm:$0xff] }
 0x7e3   :  { %v943_v22 = vpop.xlane.xlu0 %942 }
 0x7e4   :  { %1545 = vrcp.f32 %v943_v22 }
 0x7e5   :  { %v946_v23 = vpop.xlane.xlu2 %945 }
 0x7e6   :  { %1547 = vrcp.f32 %v946_v23 }
 0x7e7   :  { %1549 = vrcp.f32 %v1601_v52 }
 0x7ea   :  { %v1546_v24 = vpop.eup %1545 }
 0x7eb   :  { %v949_v25 = vmul.f32 %v1546_v24, %v1542_v17 }
 0x7ec   :  { %v1548_v26 = vpop.eup %1547 }
 0x7ed   :  { %v951_v27 = vpack.c.bf16 %v949_v25, %v949_v25  ;;  %v950_v28 = vmul.f32 %v1548_v26, %v1544_v20  ;;  %v1550_v53 = vpop.eup %1549  ;;  %v1512_v25 = vld [vmem:[%s2003_s7] ss:$0 sm:$0xff] }
 0x7ee   :  { %v1033_v56 = vmul.f32 32.0, %v1550_v53  ;;  %vm1037_vm5 = vweird.f32 %v1550_v53 }
 0x7ef   :  { %v952_v29 = vpack.c.bf16 %v950_v28, %v950_v28  ;;  %1432 = vmatmul.msk.bf16.vlgmr.msrb.gmra.mxu1 %vm195_vm1, %v951_v27 }
 0x7f0   :  { %v1034_v57 = vsub.f32 1.0, %v1033_v56 }
 0x7f1   :  { %1433 = vmatmul.msk.bf16.vlgmr.msrb.gmra.mxu2 %vm195_vm1, %v952_v29 }
 0x7f2   :  { %v1035_v58 = vmul.f32 %v1550_v53, %v1034_v57 }
 0x86c   :  { %v968_v32 = vpop.f32.mrf.mxu1 }
 0x874   :  { %v970_v33 = vpop.f32.mrf.mxu1  ;;  %v987_v36 = vpop.f32.mrf.mxu2 }
 0x875   :  { %v991_v37 = vpack.c.bf16 %v987_v36, %v968_v32  ;;  %v1491_v32 = vld [vmem:[%s2006_s10 + $0x18] sm:$0xff]  ;;  %v1490_v33 = vld [vmem:[%s2006_s10 + $0x10] sm:$0xff]  ;;  %v1489_v36 = vld [vmem:[%s2006_s10 + $0x8] sm:$0xff] }
 0x876   :  { %1172 = vmatpush.bf16.msra.mxu1 %v1491_v32 }
 0x877   :  { %1435 = vmatmul.msk.bf16.vlgmr.msrb.gmra.mxu3 %vm195_vm1, %v991_v37  ;;  %v1488_v37 = vld [vmem:[%s2006_s10] sm:$0xff] }
 0x87a   :  { %1173 = vmatpush.bf16.msra.mxu1 %v1490_v33 }
 0x87c   :  { %v989_v38 = vpop.f32.mrf.mxu2 }
 0x87e   :  { %1174 = vmatpush.bf16.msra.mxu1 %v1489_v36 }
 0x882   :  { %1175 = vmatpush.bf16.msra.mxu1 %v1488_v37 }
 0x8fa   :  { %v1009_v40 = vpop.f32.mrf.mxu3 }
 0x8fb   :  { %v1014_v41 = vadd.f32 %v1009_v40, %v1903_v59  ;;  %v1036_v59 = vadd.f32 %v1550_v53, %v1035_v58 }
 0x8fd   :  { %v1020_v42 = vadd.f32 %v1510_v39, %v1014_v41 }
 0x8ff   :  { %v1022_v43 = vadd.f32 %v1020_v42, %v1698_v4  ;;  %v1938_v4 = vsel %vm1037_vm5, %v1550_v53, %v1036_v59 }
 0x901   :  { %v1026_v46 = vsel %vm101_vm0, %v1022_v43, 0.0 }
 0x902   :  { %1027 = vadd.xlane.f32.xlu1 %v1026_v46  ;;  %v1011_v47 = vpop.f32.mrf.mxu3 }
 0x903   :  { %v1015_v48 = vadd.f32 %v1011_v47, %v1909_v62 }
 0x905   :  { %v1021_v49 = vadd.f32 %v1510_v39, %v1015_v48  ;;  %v1513_v39 = vld [vmem:[%s2005_s9] ss:$0 sm:$0xff] }
 0x906   :  { %v1514_v48 = vld [vmem:[%s2007_s11] ss:$0 sm:$0xff] }
 0x907   :  { %v1023_v50 = vadd.f32 %v1021_v49, %v1703_v5 }
 0x909   :  { %v1029_v51 = vsel %vm101_vm0, %v1023_v50, 0.0 }
 0x90a   :  { %1030 = vadd.xlane.f32.xlu2 %v1029_v51 }
 0x975   :  { %v1028_v60 = vpop.xlane.xlu1 %1027 }
 0x976   :  { %v1039_v61 = vmul.f32 %v1938_v4, %v1028_v60 }
 0x978   :  { %v1041_v62 = vsub.f32 %v1022_v43, %v1039_v61 }
 0x97a   :  { %v1043_v63 = vmul.f32 %v1041_v62, %v1041_v62 }
 0x97c   :  { %v1045_v5 = vsel %vm101_vm0, %v1043_v63, 0.0 }
 0x97d   :  { %1046 = vadd.xlane.f32.xlu0 %v1045_v5  ;;  %v1031_v0 = vpop.xlane.xlu2 %1030 }
 0x97e   :  { %v1040_v1 = vmul.f32 %v1938_v4, %v1031_v0 }
 0x980   :  { %v1042_v2 = vsub.f32 %v1023_v50, %v1040_v1 }
 0x982   :  { %v1044_v44 = vmul.f32 %v1042_v2, %v1042_v2 }
 0x984   :  { %v1048_v54 = vsel %vm101_vm0, %v1044_v44, 0.0 }
 0x985   :  { %1049 = vadd.xlane.f32.xlu1 %v1048_v54 }
 0x9f0   :  { %v1047_v6 = vpop.xlane.xlu0 %1046 }
 0x9f1   :  { %v1051_v45 = vmul.f32 %v1047_v6, %v1938_v4 }
 0x9f3   :  { %v1053_v7 = vadd.f32 1e-05, %v1051_v45 }
 0x9f5   :  { %1551 = vrsqrt.f32 %v1053_v7  ;;  %vm1061_vm7 = vweird.f32 %v1053_v7 }
 0x9f8   :  { %v1050_v8 = vpop.xlane.xlu1 %1049 }
 0x9f9   :  { %v1052_v9 = vmul.f32 %v1050_v8, %v1938_v4 }
 0x9fb   :  { %v1552_v34 = vpop.eup %1551  ;;  %v1054_v10 = vadd.f32 1e-05, %v1052_v9 }
 0x9fc   :  { %v1056_v11 = vmul.f32 %v1552_v34, %v1053_v7  ;;  %vm1062_vm6 = vweird.f32 %v1552_v34 }
 0x9fd   :  { %1553 = vrsqrt.f32 %v1054_v10  ;;  %vm1063_vm8 = vmor %vm1061_vm7, %vm1062_vm6  ;;  %vm1071_vm10 = vweird.f32 %v1054_v10 }
 0x9fe   :  { %v1057_v35 = vmul.f32 %v1552_v34, %v1056_v11 }
 0xa00   :  { %v1058_v12 = vmul.f32 0.5, %v1057_v35 }
 0xa02   :  { %v1059_v13 = vsub.f32 1.5, %v1058_v12 }
 0xa03   :  { %v1554_v14 = vpop.eup %1553 }
 0xa04   :  { %v1060_v15 = vmul.f32 %v1552_v34, %v1059_v13  ;;  %v1066_v16 = vmul.f32 %v1554_v14, %v1054_v10  ;;  %vm1072_vm9 = vweird.f32 %v1554_v14 }
 0xa05   :  { %vm1073_vm11 = vmor %vm1071_vm10, %vm1072_vm9 }
 0xa06   :  { %v1067_v17 = vmul.f32 %v1554_v14, %v1066_v16  ;;  %v1064_v18 = vsel %vm1063_vm8, %v1552_v34, %v1060_v15 }
 0xa07   :  { %v1075_v22 = vmul.f32 %v1064_v18, %v1041_v62 }
 0xa08   :  { %v1068_v19 = vmul.f32 0.5, %v1067_v17  ;;  %v1516_v17 = vld [vmem:[%s2009_s13] ss:$0 sm:$0xff]  ;;  %s1603_s13 = smov 128  }
 0xa09   :  { %v1080_v26 = vmul.f32 %v1511_v21, %v1075_v22 }
 0xa0a   :  { %v1069_v20 = vsub.f32 1.5, %v1068_v19 }
 0xa0b   :  { %v1085_v29 = vadd.f32 %v1512_v25, %v1080_v26 }
 0xa0c   :  { %v1070_v23 = vmul.f32 %v1554_v14, %v1069_v20 }
 0xa0e   :  { %v1074_v24 = vsel %vm1073_vm11, %v1554_v14, %v1070_v23  ;;  %v1515_v14 = vld [vmem:[%s2008_s12] ss:$0 sm:$0xff]  ;;  %s1602_s12 = smov [#allocation4]  }
 0xa0f   :  { %v1076_v27 = vmul.f32 %v1074_v24, %v1042_v2  ;;  %s1246_s3 = sshll.u32 %s1602_s12, 4  ;;  %s1247_s3 = int_to_ptr.vmem [resolvable:$true] %s1246_s3 }
 0xa11   :  { %v1081_v28 = vmul.f32 %v1511_v21, %v1076_v27 }
 0xa13   :  { %v1086_v30 = vadd.f32 %v1512_v25, %v1081_v28 }
 0xa15   :  { %v1087_v31 = vpack.c.bf16 %v1086_v30, %v1085_v29 }
 0xa17   :  { %1444 = vmatmul.msk.bf16.vlgmr.msra.gmra.mxu0 %vm101_vm0, %v1087_v31 }
 0xa94   :  { %v1120_v38 = vpop.f32.mrf.mxu0 }
 0xa95   :  { %v1121_v40 = vadd.f32 %v1513_v39, %v1120_v38 }
 0xa97   :  { %v1125_v43 = vmax.f32 %v1121_v40, 0.0 }
 0xa9c   :  { %v1122_v41 = vpop.f32.mrf.mxu0 }
 0xa9d   :  { %v1123_v42 = vadd.f32 %v1513_v39, %v1122_v41 }
 0xa9f   :  { %v1126_v46 = vmax.f32 %v1123_v42, 0.0 }
 0xaa1   :  { %v1127_v47 = vpack.c.bf16 %v1126_v46, %v1125_v43 }
 0xaa3   :  { %1461 = vmatmul.msk.bf16.vlgmr.msra.gmra.mxu1 %vm1164_vm12, %v1127_v47 }
 0xb20   :  { %v1177_v49 = vpop.f32.mrf.mxu1 }
 0xb21   :  { %v1178_v50 = vadd.f32 %v1514_v48, %v1177_v49 }
 0xb23   :  { %v1182_v51 = vadd.f32 %v1178_v50, %v1085_v29 }
 0xb25   :  { %v1186_v52 = vsel %vm101_vm0, %v1182_v51, 0.0 }
 0xb26   :  { %1187 = vadd.xlane.f32.xlu2 %v1186_v52 }
 0xb28   :  { %v1179_v53 = vpop.f32.mrf.mxu1 }
 0xb29   :  { %v1180_v56 = vadd.f32 %v1514_v48, %v1179_v53 }
 0xb2b   :  { %v1183_v57 = vadd.f32 %v1180_v56, %v1086_v30 }
 0xb2d   :  { %v1189_v58 = vsel %vm101_vm0, %v1183_v57, 0.0 }
 0xb2e   :  { %1190 = vadd.xlane.f32.xlu0 %v1189_v58 }
 0xb99   :  { %v1188_v59 = vpop.xlane.xlu2 %1187 }
 0xb9a   :  { %v1192_v60 = vmul.f32 %v1188_v59, %v1938_v4 }
 0xb9c   :  { %v1194_v61 = vsub.f32 %v1182_v51, %v1192_v60 }
 0xb9e   :  { %v1196_v62 = vmul.f32 %v1194_v61, %v1194_v61 }
 0xba0   :  { %v1198_v63 = vsel %vm101_vm0, %v1196_v62, 0.0 }
 0xba1   :  { %v1191_v5 = vpop.xlane.xlu0 %1190  ;;  %1199 = vadd.xlane.f32.xlu1 %v1198_v63 }
 0xba2   :  { %v1193_v0 = vmul.f32 %v1191_v5, %v1938_v4 }
 0xba4   :  { %v1195_v1 = vsub.f32 %v1183_v57, %v1193_v0 }
 0xba6   :  { %v1197_v2 = vmul.f32 %v1195_v1, %v1195_v1 }
 0xba8   :  { %v1201_v44 = vsel %vm101_vm0, %v1197_v2, 0.0 }
 0xba9   :  { %1202 = vadd.xlane.f32.xlu2 %v1201_v44 }
 0xc14   :  { %v1200_v54 = vpop.xlane.xlu1 %1199 }
 0xc15   :  { %v1204_v3 = vmul.f32 %v1200_v54, %v1938_v4 }
 0xc17   :  { %v1206_v6 = vadd.f32 1e-05, %v1204_v3 }
 0xc19   :  { %1555 = vrsqrt.f32 %v1206_v6  ;;  %vm1214_vm14 = vweird.f32 %v1206_v6 }
 0xc1c   :  { %v1203_v45 = vpop.xlane.xlu2 %1202 }
 0xc1d   :  { %v1205_v55 = vmul.f32 %v1203_v45, %v1938_v4 }
 0xc1f   :  { %v1556_v7 = vpop.eup %1555  ;;  %v1207_v8 = vadd.f32 1e-05, %v1205_v55 }
 0xc20   :  { %v1209_v9 = vmul.f32 %v1556_v7, %v1206_v6  ;;  %vm1215_vm13 = vweird.f32 %v1556_v7 }
 0xc21   :  { %1557 = vrsqrt.f32 %v1207_v8  ;;  %vm1216_vm15 = vmor %vm1214_vm14, %vm1215_vm13  ;;  %vm1224_vm2 = vweird.f32 %v1207_v8 }
 0xc22   :  { %v1210_v34 = vmul.f32 %v1556_v7, %v1209_v9 }
 0xc24   :  { %v1211_v10 = vmul.f32 0.5, %v1210_v34 }
 0xc26   :  { %v1212_v11 = vsub.f32 1.5, %v1211_v10 }
 0xc27   :  { %v1558_v35 = vpop.eup %1557 }
 0xc28   :  { %v1213_v12 = vmul.f32 %v1556_v7, %v1212_v11  ;;  %v1219_v13 = vmul.f32 %v1558_v35, %v1207_v8  ;;  %vm1225_vm1 = vweird.f32 %v1558_v35 }
 0xc29   :  { %vm1226_vm3 = vmor %vm1224_vm2, %vm1225_vm1 }
 0xc2a   :  { %v1217_v15 = vsel %vm1216_vm15, %v1556_v7, %v1213_v12  ;;  %v1220_v16 = vmul.f32 %v1558_v35, %v1219_v13 }
 0xc2b   :  { %v1228_v4 = vmul.f32 %v1217_v15, %v1194_v61 }
 0xc2c   :  { %v1221_v18 = vmul.f32 0.5, %v1220_v16 }
 0xc2d   :  { %v1233_v19 = vmul.f32 %v1515_v14, %v1228_v4 }
 0xc2e   :  { %v1222_v20 = vsub.f32 1.5, %v1221_v18 }
 0xc2f   :  { %v1238_v21 = vadd.f32 %v1516_v17, %v1233_v19 }
 0xc30   :  { %v1223_v22 = vmul.f32 %v1558_v35, %v1222_v20 }
 0xc31   :  { %1240 = vst.msk [vmem:[#allocation4] sm:$0xff] %vm101_vm0, %v1238_v21 }
 0xc32   :  { %v1227_v23 = vsel %vm1226_vm3, %v1558_v35, %v1223_v22 }
 0xc33   :  { %v1229_v24 = vmul.f32 %v1227_v23, %v1195_v1 }
 0xc35   :  { %v1234_v25 = vmul.f32 %v1515_v14, %v1229_v24 }
 0xc37   :  { %v1239_v26 = vadd.f32 %v1516_v17, %v1234_v25 }
 0xc39   :  { %1241 = vst.msk [vmem:[#allocation4 + $0x8] sm:$0xff] %vm101_vm0, %v1239_v26 }
 0xc3a   :  { %1254 = dma.vmem_to_hbm [thread:$0]  %s1247_s3, 256, %s1249_s29, [#allocation5], %s1603_s13, %s1603_s13, %s1604_s4  }
 0xc3b   :  { %1597 = dma.done.wait [#allocation5], 256  }
 0xc3c   :  { %1598 = vsyncadd [#allocation5], 4294967040 }
 0xc3d   :  { %1259 = vsyncpa [#allocation5], 1 }

</bundles_post_ra>
